<compile_context>
chip_gen: v7x
topology: tpu7x:2x2x1
jax: 0.10.0
libtpu: 0.0.40
codegen_flags: <defaults>
</compile_context>

<pallas_src>
import functools

import jax
import jax.numpy as jnp
import numpy as np
from jax import lax
from jax.experimental import pallas as pl
from jax.experimental.pallas import tpu as pltpu


# --------------------------- fused forward kernel ----------------------------
def _fused_forward_kernel(*refs, num_layers, T, B, H):
    it = iter(refs)
    x_ref = next(it)                      # (T*B, F)   time-major, flattened
    h0_ref = next(it)                     # (L, B, H)
    c0_ref = next(it)                     # (L, B, H)
    alpha_ref = next(it)                  # (1, 1) in SMEM
    lstm_refs = [next(it) for _ in range(3 * num_layers)]   # per layer: Wih, Whh, b
    g0_ref = next(it); be0_ref = next(it); w0_ref = next(it); fb0_ref = next(it)
    g1_ref = next(it); be1_ref = next(it); w1_ref = next(it); fb1_ref = next(it)
    pred_ref = next(it)                   # (B, n_out)
    seq_ref = next(it)                    # (T*B, H)   last layer's hidden states
    y_sc = next(it)                       # VMEM scratch (T*B, H) inter-layer seq

    h_sum = None
    c_sum = None
    for l in range(num_layers):
        w_ih = lstm_refs[3 * l][...]      # (Din, 4H)
        w_hh = lstm_refs[3 * l + 1][...]  # (H, 4H)
        b = lstm_refs[3 * l + 2][...]     # (1, 4H)

        # Hoisted input projection for ALL time steps: (T*B, Din) @ (Din, 4H)
        x_in = x_ref[...] if l == 0 else y_sc[...]
        gx = jnp.dot(x_in, w_ih, preferred_element_type=jnp.float32) + b

        out_ref = seq_ref if l == num_layers - 1 else y_sc
        h = h0_ref[l]                     # (B, H)
        c = c0_ref[l]                     # (B, H)

        for t in range(T):                # statically unrolled time loop
            g = gx[t * B:(t + 1) * B, :] + jnp.dot(
                h, w_hh, preferred_element_type=jnp.float32)   # (B, 4H)
            # full-lane-width nonlinearities (4H == 128 lanes), then slice
            sg = jax.nn.sigmoid(g)
            th = jnp.tanh(g)
            c = sg[:, H:2 * H] * c + sg[:, 0:H] * th[:, 2 * H:3 * H]
            h = sg[:, 3 * H:4 * H] * jnp.tanh(c)
            out_ref[t * B:(t + 1) * B, :] = h

        h_sum = h if h_sum is None else h_sum + h
        c_sum = c if c_sum is None else c_sum + c

    # ------------------------------- head -----------------------------------
    alpha = alpha_ref[0, 0]
    eps = 1e-5

    def prelu(v):
        return jnp.where(v >= 0, v, alpha * v)

    def bn(v, gamma, beta):               # training-mode BN (biased variance)
        mu = jnp.mean(v, axis=0, keepdims=True)
        var = jnp.mean((v - mu) ** 2, axis=0, keepdims=True)
        return gamma * (v - mu) * lax.rsqrt(var + eps) + beta

    # cat([h, c], -1) over layers, swapdims(0,1).sum(dim=1) == sum over layers
    xh = prelu(jnp.concatenate([h_sum, c_sum], axis=-1))       # (B, 2H)
    xh = bn(xh, g0_ref[...], be0_ref[...])
    xh = prelu(jnp.dot(xh, w0_ref[...], preferred_element_type=jnp.float32)
               + fb0_ref[...])
    xh = bn(xh, g1_ref[...], be1_ref[...])
    pred_ref[...] = (jnp.dot(xh, w1_ref[...], preferred_element_type=jnp.float32)
                     + fb1_ref[...])


# ------------------------------ full forward ----------------------------------
def revenue_forecast_lstm_forward(x_btf, h0, c0, params):
    """x_btf: (B, T, F) batch_first like the PyTorch module.
    h0, c0: (num_layers, B, H).
    Returns (prediction (B, num_outputs), sequence_outputs (T, B, H))."""
    B, T, F = x_btf.shape
    L, _, H = h0.shape
    fc_hidden = params["fc0_w"].shape[1]
    n_out = params["fc1_w"].shape[1]

    # time-major + flatten (T*B, F); rows [t*B:(t+1)*B] are time step t
    x_flat = jnp.transpose(x_btf.astype(jnp.float32), (1, 0, 2)).reshape(T * B, F)

    lstm_flat = []
    for (w_ih, w_hh, b) in params["lstm"]:
        lstm_flat += [w_ih, w_hh, b]
    head_flat = [params["bn0_gamma"], params["bn0_beta"],
                 params["fc0_w"], params["fc0_b"],
                 params["bn1_gamma"], params["bn1_beta"],
                 params["fc1_w"], params["fc1_b"]]
    inputs = [x_flat, h0, c0, params["prelu_alpha"]] + lstm_flat + head_flat

    vmem = lambda: pl.BlockSpec(memory_space=pltpu.MemorySpace.VMEM)
    smem = lambda: pl.BlockSpec(memory_space=pltpu.MemorySpace.SMEM)
    in_specs = [vmem(), vmem(), vmem(), smem()] + [vmem() for _ in range(3 * L + 8)]

    # rough cost estimate to help XLA schedule around the custom call
    flops = 0
    trans = 0
    d_in = F
    for _ in range(L):
        flops += 2 * T * B * d_in * 4 * H          # hoisted input projection
        flops += T * 2 * B * H * 4 * H             # recurrent matmuls
        trans += T * (2 * B * 4 * H + B * H)       # sigmoid/tanh per step
        d_in = H
    flops += 2 * B * 2 * H * fc_hidden + 2 * B * fc_hidden * n_out
    bytes_in = sum(int(a.size) * a.dtype.itemsize for a in inputs)
    bytes_out = 4 * (B * n_out + T * B * H)
    cost = pl.CostEstimate(flops=int(flops), transcendentals=int(trans),
                           bytes_accessed=int(bytes_in + bytes_out))

    kernel = functools.partial(_fused_forward_kernel,
                               num_layers=L, T=T, B=B, H=H)
    pred, seq_flat = pl.pallas_call(
        kernel,
        out_shape=(jax.ShapeDtypeStruct((B, n_out), jnp.float32),
                   jax.ShapeDtypeStruct((T * B, H), jnp.float32)),
        in_specs=in_specs,
        out_specs=(vmem(), vmem()),
        scratch_shapes=[pltpu.VMEM((T * B, H), jnp.float32)],
        cost_estimate=cost,
        # NOTE: at production sizes, chunk T and set vmem_limit_bytes explicitly
        # (v7x has 64 MiB physical VMEM); at these sizes defaults are ample.
    )(*inputs)
    return pred, seq_flat.reshape(T, B, H)


# ------------------------------ pure-JAX reference ----------------------------
def _ref_lstm_layer(x_tbf, w_ih, w_hh, b, h0, c0):
    H = h0.shape[-1]

    def step(carry, x_t):
        h, c = carry
        g = x_t @ w_ih + h @ w_hh + b[0]
        i = jax.nn.sigmoid(g[:, :H]); f = jax.nn.sigmoid(g[:, H:2 * H])
        gg = jnp.tanh(g[:, 2 * H:3 * H]); o = jax.nn.sigmoid(g[:, 3 * H:])
        c = f * c + i * gg
        h = o * jnp.tanh(c)
        return (h, c), h

    (hf, cf), ys = lax.scan(step, (h0, c0), x_tbf)
    return ys, hf, cf


def ref_forward(x_btf, h0, c0, params):
    seq = jnp.transpose(x_btf, (1, 0, 2)).astype(jnp.float32)
    hs, cs = [], []
    for l in range(h0.shape[0]):
        w_ih, w_hh, b = params["lstm"][l]
        seq, hf, cf = _ref_lstm_layer(seq, w_ih, w_hh, b, h0[l], c0[l])
        hs.append(hf); cs.append(cf)
    x = jnp.sum(jnp.concatenate([jnp.stack(hs), jnp.stack(cs)], axis=-1), axis=0)
    a = params["prelu_alpha"][0, 0]
    prelu = lambda v: jnp.where(v >= 0, v, a * v)
    eps = 1e-5

    def bn(v, g, be):
        mu = v.mean(0, keepdims=True)
        var = ((v - mu) ** 2).mean(0, keepdims=True)
        return g * (v - mu) / jnp.sqrt(var + eps) + be

    x = bn(prelu(x), params["bn0_gamma"], params["bn0_beta"])
    x = prelu(x @ params["fc0_w"] + params["fc0_b"])
    x = bn(x, params["bn1_gamma"], params["bn1_beta"])
    return x @ params["fc1_w"] + params["fc1_b"], seq


# ------------------------------ param init ------------------------------------
def init_params(key, num_features, num_outputs, H, num_layers, fc_hidden):
    keys = jax.random.split(key, 16)
    params = {"lstm": []}

    def orth(k, shape):
        a = jax.random.normal(k, shape, jnp.float32)
        q, _ = jnp.linalg.qr(a)
        return q[:, :shape[1]]

    kstd = 1.0 / np.sqrt(H)
    for l in range(num_layers):
        d_in = num_features if l == 0 else H
        if l == 0:
            # orthogonal weights, zero biases with forget-gate bias = 1 (x2 combined)
            w_ih = orth(keys[0], (4 * H, d_in))
            w_hh = orth(keys[1], (4 * H, H))
            b_ih = jnp.zeros((4 * H,), jnp.float32).at[H:2 * H].set(1.0)
            b_hh = jnp.zeros((4 * H,), jnp.float32).at[H:2 * H].set(1.0)
        else:
            w_ih = jax.random.uniform(keys[2 + 4 * l], (4 * H, d_in), jnp.float32,
                                      -kstd, kstd)
            w_hh = jax.random.uniform(keys[3 + 4 * l], (4 * H, H), jnp.float32,
                                      -kstd, kstd)
            b_ih = jax.random.uniform(keys[4 + 4 * l], (4 * H,), jnp.float32,
                                      -kstd, kstd)
            b_hh = jax.random.uniform(keys[5 + 4 * l], (4 * H,), jnp.float32,
                                      -kstd, kstd)
        params["lstm"].append((w_ih.T, w_hh.T, (b_ih + b_hh)[None, :]))

    twoH = 2 * H
    k0 = 1.0 / np.sqrt(twoH)
    params["fc0_w"] = jax.random.uniform(keys[10], (twoH, fc_hidden), jnp.float32,
                                         -k0, k0)
    params["fc0_b"] = jax.random.uniform(keys[11], (1, fc_hidden), jnp.float32,
                                         -k0, k0)
    k1 = 1.0 / np.sqrt(fc_hidden)
    params["fc1_w"] = jax.random.uniform(keys[12], (fc_hidden, num_outputs),
                                         jnp.float32, -k1, k1)
    params["fc1_b"] = jax.random.uniform(keys[13], (1, num_outputs), jnp.float32,
                                         -k1, k1)
    params["bn0_gamma"] = jnp.ones((1, twoH), jnp.float32)
    params["bn0_beta"] = jnp.zeros((1, twoH), jnp.float32)
    params["bn1_gamma"] = jnp.ones((1, fc_hidden), jnp.float32)
    params["bn1_beta"] = jnp.zeros((1, fc_hidden), jnp.float32)
    params["prelu_alpha"] = jnp.full((1, 1), 0.25, jnp.float32)
    return params


# --------------------------------- main ----------------------------------------
if __name__ == "__main__":
    B, T = 8, 8
    num_features = 16
    H = 32
    num_layers = 2
    fc_hidden = 64
    num_outputs = 4

    key = jax.random.PRNGKey(0)
    kx, kh, kc, kp = jax.random.split(key, 4)
    x = jax.random.normal(kx, (B, T, num_features), jnp.float32)
    h0 = jax.random.normal(kh, (num_layers, B, H), jnp.float32)
    c0 = jax.random.normal(kc, (num_layers, B, H), jnp.float32)
    params = init_params(kp, num_features, num_outputs, H, num_layers, fc_hidden)

    fwd = jax.jit(revenue_forecast_lstm_forward)
    pred, seq_out = fwd(x, h0, c0, params)
    pred = jax.block_until_ready(pred)
    seq_out = jax.block_until_ready(seq_out)

    pred_ref, seq_ref = ref_forward(x, h0, c0, params)
    assert pred.shape == (B, num_outputs)
    assert seq_out.shape == (T, B, H)
    np.testing.assert_allclose(np.asarray(pred), np.asarray(pred_ref),
                               rtol=1e-4, atol=1e-4)
    np.testing.assert_allclose(np.asarray(seq_out), np.asarray(seq_ref),
                               rtol=1e-4, atol=1e-4)
    print("KERNEL_OK")
</pallas_src>

<mosaic_0001>
module attributes {stable_mosaic.version = 11 : i64} {
  func.func @_fused_forward_kernel(%arg0: memref<64x16xf32, #tpu.memory_space<vmem>>, %arg1: memref<2x8x32xf32, #tpu.memory_space<vmem>>, %arg2: memref<2x8x32xf32, #tpu.memory_space<vmem>>, %arg3: memref<1x1xf32, #tpu.memory_space<smem>>, %arg4: memref<16x128xf32, #tpu.memory_space<vmem>>, %arg5: memref<32x128xf32, #tpu.memory_space<vmem>>, %arg6: memref<1x128xf32, #tpu.memory_space<vmem>>, %arg7: memref<32x128xf32, #tpu.memory_space<vmem>>, %arg8: memref<32x128xf32, #tpu.memory_space<vmem>>, %arg9: memref<1x128xf32, #tpu.memory_space<vmem>>, %arg10: memref<1x64xf32, #tpu.memory_space<vmem>>, %arg11: memref<1x64xf32, #tpu.memory_space<vmem>>, %arg12: memref<64x64xf32, #tpu.memory_space<vmem>>, %arg13: memref<1x64xf32, #tpu.memory_space<vmem>>, %arg14: memref<1x64xf32, #tpu.memory_space<vmem>>, %arg15: memref<1x64xf32, #tpu.memory_space<vmem>>, %arg16: memref<64x4xf32, #tpu.memory_space<vmem>>, %arg17: memref<1x4xf32, #tpu.memory_space<vmem>>, %arg18: memref<8x4xf32, #tpu.memory_space<vmem>>, %arg19: memref<64x32xf32, #tpu.memory_space<vmem>>, %arg20: memref<64x32xf32, #tpu.memory_space<vmem>>) attributes {dimension_semantics = [], scalar_prefetch = 0 : i64, scratch_operands = 1 : i64, tpu.core_type = #tpu.core_type<tc>} {
    %c0 = arith.constant 0 : index
    %c0_0 = arith.constant 0 : index
    %0 = vector.load %arg4[%c0, %c0_0] : memref<16x128xf32, #tpu.memory_space<vmem>>, vector<16x128xf32>
    %c0_1 = arith.constant 0 : index
    %c0_2 = arith.constant 0 : index
    %1 = vector.load %arg5[%c0_1, %c0_2] : memref<32x128xf32, #tpu.memory_space<vmem>>, vector<32x128xf32>
    %c0_3 = arith.constant 0 : index
    %c0_4 = arith.constant 0 : index
    %2 = vector.load %arg6[%c0_3, %c0_4] : memref<1x128xf32, #tpu.memory_space<vmem>>, vector<1x128xf32>
    %c0_5 = arith.constant 0 : index
    %c0_6 = arith.constant 0 : index
    %3 = vector.load %arg0[%c0_5, %c0_6] : memref<64x16xf32, #tpu.memory_space<vmem>>, vector<64x16xf32>
    %cst = arith.constant dense<0.000000e+00> : vector<64x128xf32>
    %4 = tpu.matmul %3, %0, %cst {dimension_numbers = #tpu.dot_dimension_numbers<[1], [0], [0], [1], [0, 0, 1, 1], [], []>} : vector<64x16xf32>, vector<16x128xf32>, vector<64x128xf32> -> vector<64x128xf32>
    %5 = vector.broadcast %2 : vector<1x128xf32> to vector<64x128xf32>
    %6 = arith.addf %4, %5 : vector<64x128xf32>
    %c0_7 = arith.constant 0 : index
    %c0_8 = arith.constant 0 : index
    %c0_9 = arith.constant 0 : index
    %7 = vector.load %arg1[%c0_7, %c0_8, %c0_9] : memref<2x8x32xf32, #tpu.memory_space<vmem>>, vector<1x8x32xf32>
    %8 = vector.shape_cast %7 : vector<1x8x32xf32> to vector<8x32xf32>
    %c0_10 = arith.constant 0 : index
    %c0_11 = arith.constant 0 : index
    %c0_12 = arith.constant 0 : index
    %9 = vector.load %arg2[%c0_10, %c0_11, %c0_12] : memref<2x8x32xf32, #tpu.memory_space<vmem>>, vector<1x8x32xf32>
    %10 = vector.shape_cast %9 : vector<1x8x32xf32> to vector<8x32xf32>
    %11 = vector.extract_strided_slice %6 {offsets = [0, 0], sizes = [8, 128], strides = [1, 1]} : vector<64x128xf32> to vector<8x128xf32>
    %cst_13 = arith.constant dense<0.000000e+00> : vector<8x128xf32>
    %12 = tpu.matmul %8, %1, %cst_13 {dimension_numbers = #tpu.dot_dimension_numbers<[1], [0], [0], [1], [0, 0, 1, 1], [], []>} : vector<8x32xf32>, vector<32x128xf32>, vector<8x128xf32> -> vector<8x128xf32>
    %13 = arith.addf %11, %12 : vector<8x128xf32>
    %14 = arith.negf %13 : vector<8x128xf32>
    %15 = math.exp %14 : vector<8x128xf32>
    %cst_14 = arith.constant 1.000000e+00 : f32
    %16 = vector.broadcast %cst_14 : f32 to vector<8x128xf32>
    %17 = arith.addf %16, %15 : vector<8x128xf32>
    %18 = arith.divf %16, %17 : vector<8x128xf32>
    %19 = math.tanh %13 : vector<8x128xf32>
    %20 = vector.extract_strided_slice %18 {offsets = [0, 32], sizes = [8, 32], strides = [1, 1]} : vector<8x128xf32> to vector<8x32xf32>
    %21 = arith.mulf %20, %10 : vector<8x32xf32>
    %22 = vector.extract_strided_slice %18 {offsets = [0, 0], sizes = [8, 32], strides = [1, 1]} : vector<8x128xf32> to vector<8x32xf32>
    %23 = vector.extract_strided_slice %19 {offsets = [0, 64], sizes = [8, 32], strides = [1, 1]} : vector<8x128xf32> to vector<8x32xf32>
    %24 = arith.mulf %22, %23 : vector<8x32xf32>
    %25 = arith.addf %21, %24 : vector<8x32xf32>
    %26 = vector.extract_strided_slice %18 {offsets = [0, 96], sizes = [8, 32], strides = [1, 1]} : vector<8x128xf32> to vector<8x32xf32>
    %27 = math.tanh %25 : vector<8x32xf32>
    %28 = arith.mulf %26, %27 : vector<8x32xf32>
    %c0_15 = arith.constant 0 : index
    %c0_16 = arith.constant 0 : index
    %29 = vector.load %arg20[%c0_15, %c0_16] : memref<64x32xf32, #tpu.memory_space<vmem>>, vector<8x32xf32>
    tpu.vector_store %arg20[%c0_15, %c0_16], %28 {strides = array<i32>} : memref<64x32xf32, #tpu.memory_space<vmem>>, vector<8x32xf32>,
    %30 = vector.extract_strided_slice %6 {offsets = [8, 0], sizes = [8, 128], strides = [1, 1]} : vector<64x128xf32> to vector<8x128xf32>
    %cst_17 = arith.constant dense<0.000000e+00> : vector<8x128xf32>
    %31 = tpu.matmul %28, %1, %cst_17 {dimension_numbers = #tpu.dot_dimension_numbers<[1], [0], [0], [1], [0, 0, 1, 1], [], []>} : vector<8x32xf32>, vector<32x128xf32>, vector<8x128xf32> -> vector<8x128xf32>
    %32 = arith.addf %30, %31 : vector<8x128xf32>
    %33 = arith.negf %32 : vector<8x128xf32>
    %34 = math.exp %33 : vector<8x128xf32>
    %cst_18 = arith.constant 1.000000e+00 : f32
    %35 = vector.broadcast %cst_18 : f32 to vector<8x128xf32>
    %36 = arith.addf %35, %34 : vector<8x128xf32>
    %37 = arith.divf %35, %36 : vector<8x128xf32>
    %38 = math.tanh %32 : vector<8x128xf32>
    %39 = vector.extract_strided_slice %37 {offsets = [0, 32], sizes = [8, 32], strides = [1, 1]} : vector<8x128xf32> to vector<8x32xf32>
    %40 = arith.mulf %39, %25 : vector<8x32xf32>
    %41 = vector.extract_strided_slice %37 {offsets = [0, 0], sizes = [8, 32], strides = [1, 1]} : vector<8x128xf32> to vector<8x32xf32>
    %42 = vector.extract_strided_slice %38 {offsets = [0, 64], sizes = [8, 32], strides = [1, 1]} : vector<8x128xf32> to vector<8x32xf32>
    %43 = arith.mulf %41, %42 : vector<8x32xf32>
    %44 = arith.addf %40, %43 : vector<8x32xf32>
    %45 = vector.extract_strided_slice %37 {offsets = [0, 96], sizes = [8, 32], strides = [1, 1]} : vector<8x128xf32> to vector<8x32xf32>
    %46 = math.tanh %44 : vector<8x32xf32>
    %47 = arith.mulf %45, %46 : vector<8x32xf32>
    %c8 = arith.constant 8 : index
    %c0_19 = arith.constant 0 : index
    %48 = vector.load %arg20[%c8, %c0_19] : memref<64x32xf32, #tpu.memory_space<vmem>>, vector<8x32xf32>
    tpu.vector_store %arg20[%c8, %c0_19], %47 {strides = array<i32>} : memref<64x32xf32, #tpu.memory_space<vmem>>, vector<8x32xf32>,
    %49 = vector.extract_strided_slice %6 {offsets = [16, 0], sizes = [8, 128], strides = [1, 1]} : vector<64x128xf32> to vector<8x128xf32>
    %cst_20 = arith.constant dense<0.000000e+00> : vector<8x128xf32>
    %50 = tpu.matmul %47, %1, %cst_20 {dimension_numbers = #tpu.dot_dimension_numbers<[1], [0], [0], [1], [0, 0, 1, 1], [], []>} : vector<8x32xf32>, vector<32x128xf32>, vector<8x128xf32> -> vector<8x128xf32>
    %51 = arith.addf %49, %50 : vector<8x128xf32>
    %52 = arith.negf %51 : vector<8x128xf32>
    %53 = math.exp %52 : vector<8x128xf32>
    %cst_21 = arith.constant 1.000000e+00 : f32
    %54 = vector.broadcast %cst_21 : f32 to vector<8x128xf32>
    %55 = arith.addf %54, %53 : vector<8x128xf32>
    %56 = arith.divf %54, %55 : vector<8x128xf32>
    %57 = math.tanh %51 : vector<8x128xf32>
    %58 = vector.extract_strided_slice %56 {offsets = [0, 32], sizes = [8, 32], strides = [1, 1]} : vector<8x128xf32> to vector<8x32xf32>
    %59 = arith.mulf %58, %44 : vector<8x32xf32>
    %60 = vector.extract_strided_slice %56 {offsets = [0, 0], sizes = [8, 32], strides = [1, 1]} : vector<8x128xf32> to vector<8x32xf32>
    %61 = vector.extract_strided_slice %57 {offsets = [0, 64], sizes = [8, 32], strides = [1, 1]} : vector<8x128xf32> to vector<8x32xf32>
    %62 = arith.mulf %60, %61 : vector<8x32xf32>
    %63 = arith.addf %59, %62 : vector<8x32xf32>
    %64 = vector.extract_strided_slice %56 {offsets = [0, 96], sizes = [8, 32], strides = [1, 1]} : vector<8x128xf32> to vector<8x32xf32>
    %65 = math.tanh %63 : vector<8x32xf32>
    %66 = arith.mulf %64, %65 : vector<8x32xf32>
    %c16 = arith.constant 16 : index
    %c0_22 = arith.constant 0 : index
    %67 = vector.load %arg20[%c16, %c0_22] : memref<64x32xf32, #tpu.memory_space<vmem>>, vector<8x32xf32>
    tpu.vector_store %arg20[%c16, %c0_22], %66 {strides = array<i32>} : memref<64x32xf32, #tpu.memory_space<vmem>>, vector<8x32xf32>,
    %68 = vector.extract_strided_slice %6 {offsets = [24, 0], sizes = [8, 128], strides = [1, 1]} : vector<64x128xf32> to vector<8x128xf32>
    %cst_23 = arith.constant dense<0.000000e+00> : vector<8x128xf32>
    %69 = tpu.matmul %66, %1, %cst_23 {dimension_numbers = #tpu.dot_dimension_numbers<[1], [0], [0], [1], [0, 0, 1, 1], [], []>} : vector<8x32xf32>, vector<32x128xf32>, vector<8x128xf32> -> vector<8x128xf32>
    %70 = arith.addf %68, %69 : vector<8x128xf32>
    %71 = arith.negf %70 : vector<8x128xf32>
    %72 = math.exp %71 : vector<8x128xf32>
    %cst_24 = arith.constant 1.000000e+00 : f32
    %73 = vector.broadcast %cst_24 : f32 to vector<8x128xf32>
    %74 = arith.addf %73, %72 : vector<8x128xf32>
    %75 = arith.divf %73, %74 : vector<8x128xf32>
    %76 = math.tanh %70 : vector<8x128xf32>
    %77 = vector.extract_strided_slice %75 {offsets = [0, 32], sizes = [8, 32], strides = [1, 1]} : vector<8x128xf32> to vector<8x32xf32>
    %78 = arith.mulf %77, %63 : vector<8x32xf32>
    %79 = vector.extract_strided_slice %75 {offsets = [0, 0], sizes = [8, 32], strides = [1, 1]} : vector<8x128xf32> to vector<8x32xf32>
    %80 = vector.extract_strided_slice %76 {offsets = [0, 64], sizes = [8, 32], strides = [1, 1]} : vector<8x128xf32> to vector<8x32xf32>
    %81 = arith.mulf %79, %80 : vector<8x32xf32>
    %82 = arith.addf %78, %81 : vector<8x32xf32>
    %83 = vector.extract_strided_slice %75 {offsets = [0, 96], sizes = [8, 32], strides = [1, 1]} : vector<8x128xf32> to vector<8x32xf32>
    %84 = math.tanh %82 : vector<8x32xf32>
    %85 = arith.mulf %83, %84 : vector<8x32xf32>
    %c24 = arith.constant 24 : index
    %c0_25 = arith.constant 0 : index
    %86 = vector.load %arg20[%c24, %c0_25] : memref<64x32xf32, #tpu.memory_space<vmem>>, vector<8x32xf32>
    tpu.vector_store %arg20[%c24, %c0_25], %85 {strides = array<i32>} : memref<64x32xf32, #tpu.memory_space<vmem>>, vector<8x32xf32>,
    %87 = vector.extract_strided_slice %6 {offsets = [32, 0], sizes = [8, 128], strides = [1, 1]} : vector<64x128xf32> to vector<8x128xf32>
    %cst_26 = arith.constant dense<0.000000e+00> : vector<8x128xf32>
    %88 = tpu.matmul %85, %1, %cst_26 {dimension_numbers = #tpu.dot_dimension_numbers<[1], [0], [0], [1], [0, 0, 1, 1], [], []>} : vector<8x32xf32>, vector<32x128xf32>, vector<8x128xf32> -> vector<8x128xf32>
    %89 = arith.addf %87, %88 : vector<8x128xf32>
    %90 = arith.negf %89 : vector<8x128xf32>
    %91 = math.exp %90 : vector<8x128xf32>
    %cst_27 = arith.constant 1.000000e+00 : f32
    %92 = vector.broadcast %cst_27 : f32 to vector<8x128xf32>
    %93 = arith.addf %92, %91 : vector<8x128xf32>
    %94 = arith.divf %92, %93 : vector<8x128xf32>
    %95 = math.tanh %89 : vector<8x128xf32>
    %96 = vector.extract_strided_slice %94 {offsets = [0, 32], sizes = [8, 32], strides = [1, 1]} : vector<8x128xf32> to vector<8x32xf32>
    %97 = arith.mulf %96, %82 : vector<8x32xf32>
    %98 = vector.extract_strided_slice %94 {offsets = [0, 0], sizes = [8, 32], strides = [1, 1]} : vector<8x128xf32> to vector<8x32xf32>
    %99 = vector.extract_strided_slice %95 {offsets = [0, 64], sizes = [8, 32], strides = [1, 1]} : vector<8x128xf32> to vector<8x32xf32>
    %100 = arith.mulf %98, %99 : vector<8x32xf32>
    %101 = arith.addf %97, %100 : vector<8x32xf32>
    %102 = vector.extract_strided_slice %94 {offsets = [0, 96], sizes = [8, 32], strides = [1, 1]} : vector<8x128xf32> to vector<8x32xf32>
    %103 = math.tanh %101 : vector<8x32xf32>
    %104 = arith.mulf %102, %103 : vector<8x32xf32>
    %c32 = arith.constant 32 : index
    %c0_28 = arith.constant 0 : index
    %105 = vector.load %arg20[%c32, %c0_28] : memref<64x32xf32, #tpu.memory_space<vmem>>, vector<8x32xf32>
    tpu.vector_store %arg20[%c32, %c0_28], %104 {strides = array<i32>} : memref<64x32xf32, #tpu.memory_space<vmem>>, vector<8x32xf32>,
    %106 = vector.extract_strided_slice %6 {offsets = [40, 0], sizes = [8, 128], strides = [1, 1]} : vector<64x128xf32> to vector<8x128xf32>
    %cst_29 = arith.constant dense<0.000000e+00> : vector<8x128xf32>
    %107 = tpu.matmul %104, %1, %cst_29 {dimension_numbers = #tpu.dot_dimension_numbers<[1], [0], [0], [1], [0, 0, 1, 1], [], []>} : vector<8x32xf32>, vector<32x128xf32>, vector<8x128xf32> -> vector<8x128xf32>
    %108 = arith.addf %106, %107 : vector<8x128xf32>
    %109 = arith.negf %108 : vector<8x128xf32>
    %110 = math.exp %109 : vector<8x128xf32>
    %cst_30 = arith.constant 1.000000e+00 : f32
    %111 = vector.broadcast %cst_30 : f32 to vector<8x128xf32>
    %112 = arith.addf %111, %110 : vector<8x128xf32>
    %113 = arith.divf %111, %112 : vector<8x128xf32>
    %114 = math.tanh %108 : vector<8x128xf32>
    %115 = vector.extract_strided_slice %113 {offsets = [0, 32], sizes = [8, 32], strides = [1, 1]} : vector<8x128xf32> to vector<8x32xf32>
    %116 = arith.mulf %115, %101 : vector<8x32xf32>
    %117 = vector.extract_strided_slice %113 {offsets = [0, 0], sizes = [8, 32], strides = [1, 1]} : vector<8x128xf32> to vector<8x32xf32>
    %118 = vector.extract_strided_slice %114 {offsets = [0, 64], sizes = [8, 32], strides = [1, 1]} : vector<8x128xf32> to vector<8x32xf32>
    %119 = arith.mulf %117, %118 : vector<8x32xf32>
    %120 = arith.addf %116, %119 : vector<8x32xf32>
    %121 = vector.extract_strided_slice %113 {offsets = [0, 96], sizes = [8, 32], strides = [1, 1]} : vector<8x128xf32> to vector<8x32xf32>
    %122 = math.tanh %120 : vector<8x32xf32>
    %123 = arith.mulf %121, %122 : vector<8x32xf32>
    %c40 = arith.constant 40 : index
    %c0_31 = arith.constant 0 : index
    %124 = vector.load %arg20[%c40, %c0_31] : memref<64x32xf32, #tpu.memory_space<vmem>>, vector<8x32xf32>
    tpu.vector_store %arg20[%c40, %c0_31], %123 {strides = array<i32>} : memref<64x32xf32, #tpu.memory_space<vmem>>, vector<8x32xf32>,
    %125 = vector.extract_strided_slice %6 {offsets = [48, 0], sizes = [8, 128], strides = [1, 1]} : vector<64x128xf32> to vector<8x128xf32>
    %cst_32 = arith.constant dense<0.000000e+00> : vector<8x128xf32>
    %126 = tpu.matmul %123, %1, %cst_32 {dimension_numbers = #tpu.dot_dimension_numbers<[1], [0], [0], [1], [0, 0, 1, 1], [], []>} : vector<8x32xf32>, vector<32x128xf32>, vector<8x128xf32> -> vector<8x128xf32>
    %127 = arith.addf %125, %126 : vector<8x128xf32>
    %128 = arith.negf %127 : vector<8x128xf32>
    %129 = math.exp %128 : vector<8x128xf32>
    %cst_33 = arith.constant 1.000000e+00 : f32
    %130 = vector.broadcast %cst_33 : f32 to vector<8x128xf32>
    %131 = arith.addf %130, %129 : vector<8x128xf32>
    %132 = arith.divf %130, %131 : vector<8x128xf32>
    %133 = math.tanh %127 : vector<8x128xf32>
    %134 = vector.extract_strided_slice %132 {offsets = [0, 32], sizes = [8, 32], strides = [1, 1]} : vector<8x128xf32> to vector<8x32xf32>
    %135 = arith.mulf %134, %120 : vector<8x32xf32>
    %136 = vector.extract_strided_slice %132 {offsets = [0, 0], sizes = [8, 32], strides = [1, 1]} : vector<8x128xf32> to vector<8x32xf32>
    %137 = vector.extract_strided_slice %133 {offsets = [0, 64], sizes = [8, 32], strides = [1, 1]} : vector<8x128xf32> to vector<8x32xf32>
    %138 = arith.mulf %136, %137 : vector<8x32xf32>
    %139 = arith.addf %135, %138 : vector<8x32xf32>
    %140 = vector.extract_strided_slice %132 {offsets = [0, 96], sizes = [8, 32], strides = [1, 1]} : vector<8x128xf32> to vector<8x32xf32>
    %141 = math.tanh %139 : vector<8x32xf32>
    %142 = arith.mulf %140, %141 : vector<8x32xf32>
    %c48 = arith.constant 48 : index
    %c0_34 = arith.constant 0 : index
    %143 = vector.load %arg20[%c48, %c0_34] : memref<64x32xf32, #tpu.memory_space<vmem>>, vector<8x32xf32>
    tpu.vector_store %arg20[%c48, %c0_34], %142 {strides = array<i32>} : memref<64x32xf32, #tpu.memory_space<vmem>>, vector<8x32xf32>,
    %144 = vector.extract_strided_slice %6 {offsets = [56, 0], sizes = [8, 128], strides = [1, 1]} : vector<64x128xf32> to vector<8x128xf32>
    %cst_35 = arith.constant dense<0.000000e+00> : vector<8x128xf32>
    %145 = tpu.matmul %142, %1, %cst_35 {dimension_numbers = #tpu.dot_dimension_numbers<[1], [0], [0], [1], [0, 0, 1, 1], [], []>} : vector<8x32xf32>, vector<32x128xf32>, vector<8x128xf32> -> vector<8x128xf32>
    %146 = arith.addf %144, %145 : vector<8x128xf32>
    %147 = arith.negf %146 : vector<8x128xf32>
    %148 = math.exp %147 : vector<8x128xf32>
    %cst_36 = arith.constant 1.000000e+00 : f32
    %149 = vector.broadcast %cst_36 : f32 to vector<8x128xf32>
    %150 = arith.addf %149, %148 : vector<8x128xf32>
    %151 = arith.divf %149, %150 : vector<8x128xf32>
    %152 = math.tanh %146 : vector<8x128xf32>
    %153 = vector.extract_strided_slice %151 {offsets = [0, 32], sizes = [8, 32], strides = [1, 1]} : vector<8x128xf32> to vector<8x32xf32>
    %154 = arith.mulf %153, %139 : vector<8x32xf32>
    %155 = vector.extract_strided_slice %151 {offsets = [0, 0], sizes = [8, 32], strides = [1, 1]} : vector<8x128xf32> to vector<8x32xf32>
    %156 = vector.extract_strided_slice %152 {offsets = [0, 64], sizes = [8, 32], strides = [1, 1]} : vector<8x128xf32> to vector<8x32xf32>
    %157 = arith.mulf %155, %156 : vector<8x32xf32>
    %158 = arith.addf %154, %157 : vector<8x32xf32>
    %159 = vector.extract_strided_slice %151 {offsets = [0, 96], sizes = [8, 32], strides = [1, 1]} : vector<8x128xf32> to vector<8x32xf32>
    %160 = math.tanh %158 : vector<8x32xf32>
    %161 = arith.mulf %159, %160 : vector<8x32xf32>
    %c56 = arith.constant 56 : index
    %c0_37 = arith.constant 0 : index
    %162 = vector.load %arg20[%c56, %c0_37] : memref<64x32xf32, #tpu.memory_space<vmem>>, vector<8x32xf32>
    tpu.vector_store %arg20[%c56, %c0_37], %161 {strides = array<i32>} : memref<64x32xf32, #tpu.memory_space<vmem>>, vector<8x32xf32>,
    %c0_38 = arith.constant 0 : index
    %c0_39 = arith.constant 0 : index
    %163 = vector.load %arg7[%c0_38, %c0_39] : memref<32x128xf32, #tpu.memory_space<vmem>>, vector<32x128xf32>
    %c0_40 = arith.constant 0 : index
    %c0_41 = arith.constant 0 : index
    %164 = vector.load %arg8[%c0_40, %c0_41] : memref<32x128xf32, #tpu.memory_space<vmem>>, vector<32x128xf32>
    %c0_42 = arith.constant 0 : index
    %c0_43 = arith.constant 0 : index
    %165 = vector.load %arg9[%c0_42, %c0_43] : memref<1x128xf32, #tpu.memory_space<vmem>>, vector<1x128xf32>
    %c0_44 = arith.constant 0 : index
    %c0_45 = arith.constant 0 : index
    %166 = vector.load %arg20[%c0_44, %c0_45] : memref<64x32xf32, #tpu.memory_space<vmem>>, vector<64x32xf32>
    %cst_46 = arith.constant dense<0.000000e+00> : vector<64x128xf32>
    %167 = tpu.matmul %166, %163, %cst_46 {dimension_numbers = #tpu.dot_dimension_numbers<[1], [0], [0], [1], [0, 0, 1, 1], [], []>} : vector<64x32xf32>, vector<32x128xf32>, vector<64x128xf32> -> vector<64x128xf32>
    %168 = vector.broadcast %165 : vector<1x128xf32> to vector<64x128xf32>
    %169 = arith.addf %167, %168 : vector<64x128xf32>
    %c1 = arith.constant 1 : index
    %c0_47 = arith.constant 0 : index
    %c0_48 = arith.constant 0 : index
    %170 = vector.load %arg1[%c1, %c0_47, %c0_48] : memref<2x8x32xf32, #tpu.memory_space<vmem>>, vector<1x8x32xf32>
    %171 = vector.shape_cast %170 : vector<1x8x32xf32> to vector<8x32xf32>
    %c1_49 = arith.constant 1 : index
    %c0_50 = arith.constant 0 : index
    %c0_51 = arith.constant 0 : index
    %172 = vector.load %arg2[%c1_49, %c0_50, %c0_51] : memref<2x8x32xf32, #tpu.memory_space<vmem>>, vector<1x8x32xf32>
    %173 = vector.shape_cast %172 : vector<1x8x32xf32> to vector<8x32xf32>
    %174 = vector.extract_strided_slice %169 {offsets = [0, 0], sizes = [8, 128], strides = [1, 1]} : vector<64x128xf32> to vector<8x128xf32>
    %cst_52 = arith.constant dense<0.000000e+00> : vector<8x128xf32>
    %175 = tpu.matmul %171, %164, %cst_52 {dimension_numbers = #tpu.dot_dimension_numbers<[1], [0], [0], [1], [0, 0, 1, 1], [], []>} : vector<8x32xf32>, vector<32x128xf32>, vector<8x128xf32> -> vector<8x128xf32>
    %176 = arith.addf %174, %175 : vector<8x128xf32>
    %177 = arith.negf %176 : vector<8x128xf32>
    %178 = math.exp %177 : vector<8x128xf32>
    %cst_53 = arith.constant 1.000000e+00 : f32
    %179 = vector.broadcast %cst_53 : f32 to vector<8x128xf32>
    %180 = arith.addf %179, %178 : vector<8x128xf32>
    %181 = arith.divf %179, %180 : vector<8x128xf32>
    %182 = math.tanh %176 : vector<8x128xf32>
    %183 = vector.extract_strided_slice %181 {offsets = [0, 32], sizes = [8, 32], strides = [1, 1]} : vector<8x128xf32> to vector<8x32xf32>
    %184 = arith.mulf %183, %173 : vector<8x32xf32>
    %185 = vector.extract_strided_slice %181 {offsets = [0, 0], sizes = [8, 32], strides = [1, 1]} : vector<8x128xf32> to vector<8x32xf32>
    %186 = vector.extract_strided_slice %182 {offsets = [0, 64], sizes = [8, 32], strides = [1, 1]} : vector<8x128xf32> to vector<8x32xf32>
    %187 = arith.mulf %185, %186 : vector<8x32xf32>
    %188 = arith.addf %184, %187 : vector<8x32xf32>
    %189 = vector.extract_strided_slice %181 {offsets = [0, 96], sizes = [8, 32], strides = [1, 1]} : vector<8x128xf32> to vector<8x32xf32>
    %190 = math.tanh %188 : vector<8x32xf32>
    %191 = arith.mulf %189, %190 : vector<8x32xf32>
    %c0_54 = arith.constant 0 : index
    %c0_55 = arith.constant 0 : index
    %192 = vector.load %arg19[%c0_54, %c0_55] : memref<64x32xf32, #tpu.memory_space<vmem>>, vector<8x32xf32>
    tpu.vector_store %arg19[%c0_54, %c0_55], %191 {strides = array<i32>} : memref<64x32xf32, #tpu.memory_space<vmem>>, vector<8x32xf32>,
    %193 = vector.extract_strided_slice %169 {offsets = [8, 0], sizes = [8, 128], strides = [1, 1]} : vector<64x128xf32> to vector<8x128xf32>
    %cst_56 = arith.constant dense<0.000000e+00> : vector<8x128xf32>
    %194 = tpu.matmul %191, %164, %cst_56 {dimension_numbers = #tpu.dot_dimension_numbers<[1], [0], [0], [1], [0, 0, 1, 1], [], []>} : vector<8x32xf32>, vector<32x128xf32>, vector<8x128xf32> -> vector<8x128xf32>
    %195 = arith.addf %193, %194 : vector<8x128xf32>
    %196 = arith.negf %195 : vector<8x128xf32>
    %197 = math.exp %196 : vector<8x128xf32>
    %cst_57 = arith.constant 1.000000e+00 : f32
    %198 = vector.broadcast %cst_57 : f32 to vector<8x128xf32>
    %199 = arith.addf %198, %197 : vector<8x128xf32>
    %200 = arith.divf %198, %199 : vector<8x128xf32>
    %201 = math.tanh %195 : vector<8x128xf32>
    %202 = vector.extract_strided_slice %200 {offsets = [0, 32], sizes = [8, 32], strides = [1, 1]} : vector<8x128xf32> to vector<8x32xf32>
    %203 = arith.mulf %202, %188 : vector<8x32xf32>
    %204 = vector.extract_strided_slice %200 {offsets = [0, 0], sizes = [8, 32], strides = [1, 1]} : vector<8x128xf32> to vector<8x32xf32>
    %205 = vector.extract_strided_slice %201 {offsets = [0, 64], sizes = [8, 32], strides = [1, 1]} : vector<8x128xf32> to vector<8x32xf32>
    %206 = arith.mulf %204, %205 : vector<8x32xf32>
    %207 = arith.addf %203, %206 : vector<8x32xf32>
    %208 = vector.extract_strided_slice %200 {offsets = [0, 96], sizes = [8, 32], strides = [1, 1]} : vector<8x128xf32> to vector<8x32xf32>
    %209 = math.tanh %207 : vector<8x32xf32>
    %210 = arith.mulf %208, %209 : vector<8x32xf32>
    %c8_58 = arith.constant 8 : index
    %c0_59 = arith.constant 0 : index
    %211 = vector.load %arg19[%c8_58, %c0_59] : memref<64x32xf32, #tpu.memory_space<vmem>>, vector<8x32xf32>
    tpu.vector_store %arg19[%c8_58, %c0_59], %210 {strides = array<i32>} : memref<64x32xf32, #tpu.memory_space<vmem>>, vector<8x32xf32>,
    %212 = vector.extract_strided_slice %169 {offsets = [16, 0], sizes = [8, 128], strides = [1, 1]} : vector<64x128xf32> to vector<8x128xf32>
    %cst_60 = arith.constant dense<0.000000e+00> : vector<8x128xf32>
    %213 = tpu.matmul %210, %164, %cst_60 {dimension_numbers = #tpu.dot_dimension_numbers<[1], [0], [0], [1], [0, 0, 1, 1], [], []>} : vector<8x32xf32>, vector<32x128xf32>, vector<8x128xf32> -> vector<8x128xf32>
    %214 = arith.addf %212, %213 : vector<8x128xf32>
    %215 = arith.negf %214 : vector<8x128xf32>
    %216 = math.exp %215 : vector<8x128xf32>
    %cst_61 = arith.constant 1.000000e+00 : f32
    %217 = vector.broadcast %cst_61 : f32 to vector<8x128xf32>
    %218 = arith.addf %217, %216 : vector<8x128xf32>
    %219 = arith.divf %217, %218 : vector<8x128xf32>
    %220 = math.tanh %214 : vector<8x128xf32>
    %221 = vector.extract_strided_slice %219 {offsets = [0, 32], sizes = [8, 32], strides = [1, 1]} : vector<8x128xf32> to vector<8x32xf32>
    %222 = arith.mulf %221, %207 : vector<8x32xf32>
    %223 = vector.extract_strided_slice %219 {offsets = [0, 0], sizes = [8, 32], strides = [1, 1]} : vector<8x128xf32> to vector<8x32xf32>
    %224 = vector.extract_strided_slice %220 {offsets = [0, 64], sizes = [8, 32], strides = [1, 1]} : vector<8x128xf32> to vector<8x32xf32>
    %225 = arith.mulf %223, %224 : vector<8x32xf32>
    %226 = arith.addf %222, %225 : vector<8x32xf32>
    %227 = vector.extract_strided_slice %219 {offsets = [0, 96], sizes = [8, 32], strides = [1, 1]} : vector<8x128xf32> to vector<8x32xf32>
    %228 = math.tanh %226 : vector<8x32xf32>
    %229 = arith.mulf %227, %228 : vector<8x32xf32>
    %c16_62 = arith.constant 16 : index
    %c0_63 = arith.constant 0 : index
    %230 = vector.load %arg19[%c16_62, %c0_63] : memref<64x32xf32, #tpu.memory_space<vmem>>, vector<8x32xf32>
    tpu.vector_store %arg19[%c16_62, %c0_63], %229 {strides = array<i32>} : memref<64x32xf32, #tpu.memory_space<vmem>>, vector<8x32xf32>,
    %231 = vector.extract_strided_slice %169 {offsets = [24, 0], sizes = [8, 128], strides = [1, 1]} : vector<64x128xf32> to vector<8x128xf32>
    %cst_64 = arith.constant dense<0.000000e+00> : vector<8x128xf32>
    %232 = tpu.matmul %229, %164, %cst_64 {dimension_numbers = #tpu.dot_dimension_numbers<[1], [0], [0], [1], [0, 0, 1, 1], [], []>} : vector<8x32xf32>, vector<32x128xf32>, vector<8x128xf32> -> vector<8x128xf32>
    %233 = arith.addf %231, %232 : vector<8x128xf32>
    %234 = arith.negf %233 : vector<8x128xf32>
    %235 = math.exp %234 : vector<8x128xf32>
    %cst_65 = arith.constant 1.000000e+00 : f32
    %236 = vector.broadcast %cst_65 : f32 to vector<8x128xf32>
    %237 = arith.addf %236, %235 : vector<8x128xf32>
    %238 = arith.divf %236, %237 : vector<8x128xf32>
    %239 = math.tanh %233 : vector<8x128xf32>
    %240 = vector.extract_strided_slice %238 {offsets = [0, 32], sizes = [8, 32], strides = [1, 1]} : vector<8x128xf32> to vector<8x32xf32>
    %241 = arith.mulf %240, %226 : vector<8x32xf32>
    %242 = vector.extract_strided_slice %238 {offsets = [0, 0], sizes = [8, 32], strides = [1, 1]} : vector<8x128xf32> to vector<8x32xf32>
    %243 = vector.extract_strided_slice %239 {offsets = [0, 64], sizes = [8, 32], strides = [1, 1]} : vector<8x128xf32> to vector<8x32xf32>
    %244 = arith.mulf %242, %243 : vector<8x32xf32>
    %245 = arith.addf %241, %244 : vector<8x32xf32>
    %246 = vector.extract_strided_slice %238 {offsets = [0, 96], sizes = [8, 32], strides = [1, 1]} : vector<8x128xf32> to vector<8x32xf32>
    %247 = math.tanh %245 : vector<8x32xf32>
    %248 = arith.mulf %246, %247 : vector<8x32xf32>
    %c24_66 = arith.constant 24 : index
    %c0_67 = arith.constant 0 : index
    %249 = vector.load %arg19[%c24_66, %c0_67] : memref<64x32xf32, #tpu.memory_space<vmem>>, vector<8x32xf32>
    tpu.vector_store %arg19[%c24_66, %c0_67], %248 {strides = array<i32>} : memref<64x32xf32, #tpu.memory_space<vmem>>, vector<8x32xf32>,
    %250 = vector.extract_strided_slice %169 {offsets = [32, 0], sizes = [8, 128], strides = [1, 1]} : vector<64x128xf32> to vector<8x128xf32>
    %cst_68 = arith.constant dense<0.000000e+00> : vector<8x128xf32>
    %251 = tpu.matmul %248, %164, %cst_68 {dimension_numbers = #tpu.dot_dimension_numbers<[1], [0], [0], [1], [0, 0, 1, 1], [], []>} : vector<8x32xf32>, vector<32x128xf32>, vector<8x128xf32> -> vector<8x128xf32>
    %252 = arith.addf %250, %251 : vector<8x128xf32>
    %253 = arith.negf %252 : vector<8x128xf32>
    %254 = math.exp %253 : vector<8x128xf32>
    %cst_69 = arith.constant 1.000000e+00 : f32
    %255 = vector.broadcast %cst_69 : f32 to vector<8x128xf32>
    %256 = arith.addf %255, %254 : vector<8x128xf32>
    %257 = arith.divf %255, %256 : vector<8x128xf32>
    %258 = math.tanh %252 : vector<8x128xf32>
    %259 = vector.extract_strided_slice %257 {offsets = [0, 32], sizes = [8, 32], strides = [1, 1]} : vector<8x128xf32> to vector<8x32xf32>
    %260 = arith.mulf %259, %245 : vector<8x32xf32>
    %261 = vector.extract_strided_slice %257 {offsets = [0, 0], sizes = [8, 32], strides = [1, 1]} : vector<8x128xf32> to vector<8x32xf32>
    %262 = vector.extract_strided_slice %258 {offsets = [0, 64], sizes = [8, 32], strides = [1, 1]} : vector<8x128xf32> to vector<8x32xf32>
    %263 = arith.mulf %261, %262 : vector<8x32xf32>
    %264 = arith.addf %260, %263 : vector<8x32xf32>
    %265 = vector.extract_strided_slice %257 {offsets = [0, 96], sizes = [8, 32], strides = [1, 1]} : vector<8x128xf32> to vector<8x32xf32>
    %266 = math.tanh %264 : vector<8x32xf32>
    %267 = arith.mulf %265, %266 : vector<8x32xf32>
    %c32_70 = arith.constant 32 : index
    %c0_71 = arith.constant 0 : index
    %268 = vector.load %arg19[%c32_70, %c0_71] : memref<64x32xf32, #tpu.memory_space<vmem>>, vector<8x32xf32>
    tpu.vector_store %arg19[%c32_70, %c0_71], %267 {strides = array<i32>} : memref<64x32xf32, #tpu.memory_space<vmem>>, vector<8x32xf32>,
    %269 = vector.extract_strided_slice %169 {offsets = [40, 0], sizes = [8, 128], strides = [1, 1]} : vector<64x128xf32> to vector<8x128xf32>
    %cst_72 = arith.constant dense<0.000000e+00> : vector<8x128xf32>
    %270 = tpu.matmul %267, %164, %cst_72 {dimension_numbers = #tpu.dot_dimension_numbers<[1], [0], [0], [1], [0, 0, 1, 1], [], []>} : vector<8x32xf32>, vector<32x128xf32>, vector<8x128xf32> -> vector<8x128xf32>
    %271 = arith.addf %269, %270 : vector<8x128xf32>
    %272 = arith.negf %271 : vector<8x128xf32>
    %273 = math.exp %272 : vector<8x128xf32>
    %cst_73 = arith.constant 1.000000e+00 : f32
    %274 = vector.broadcast %cst_73 : f32 to vector<8x128xf32>
    %275 = arith.addf %274, %273 : vector<8x128xf32>
    %276 = arith.divf %274, %275 : vector<8x128xf32>
    %277 = math.tanh %271 : vector<8x128xf32>
    %278 = vector.extract_strided_slice %276 {offsets = [0, 32], sizes = [8, 32], strides = [1, 1]} : vector<8x128xf32> to vector<8x32xf32>
    %279 = arith.mulf %278, %264 : vector<8x32xf32>
    %280 = vector.extract_strided_slice %276 {offsets = [0, 0], sizes = [8, 32], strides = [1, 1]} : vector<8x128xf32> to vector<8x32xf32>
    %281 = vector.extract_strided_slice %277 {offsets = [0, 64], sizes = [8, 32], strides = [1, 1]} : vector<8x128xf32> to vector<8x32xf32>
    %282 = arith.mulf %280, %281 : vector<8x32xf32>
    %283 = arith.addf %279, %282 : vector<8x32xf32>
    %284 = vector.extract_strided_slice %276 {offsets = [0, 96], sizes = [8, 32], strides = [1, 1]} : vector<8x128xf32> to vector<8x32xf32>
    %285 = math.tanh %283 : vector<8x32xf32>
    %286 = arith.mulf %284, %285 : vector<8x32xf32>
    %c40_74 = arith.constant 40 : index
    %c0_75 = arith.constant 0 : index
    %287 = vector.load %arg19[%c40_74, %c0_75] : memref<64x32xf32, #tpu.memory_space<vmem>>, vector<8x32xf32>
    tpu.vector_store %arg19[%c40_74, %c0_75], %286 {strides = array<i32>} : memref<64x32xf32, #tpu.memory_space<vmem>>, vector<8x32xf32>,
    %288 = vector.extract_strided_slice %169 {offsets = [48, 0], sizes = [8, 128], strides = [1, 1]} : vector<64x128xf32> to vector<8x128xf32>
    %cst_76 = arith.constant dense<0.000000e+00> : vector<8x128xf32>
    %289 = tpu.matmul %286, %164, %cst_76 {dimension_numbers = #tpu.dot_dimension_numbers<[1], [0], [0], [1], [0, 0, 1, 1], [], []>} : vector<8x32xf32>, vector<32x128xf32>, vector<8x128xf32> -> vector<8x128xf32>
    %290 = arith.addf %288, %289 : vector<8x128xf32>
    %291 = arith.negf %290 : vector<8x128xf32>
    %292 = math.exp %291 : vector<8x128xf32>
    %cst_77 = arith.constant 1.000000e+00 : f32
    %293 = vector.broadcast %cst_77 : f32 to vector<8x128xf32>
    %294 = arith.addf %293, %292 : vector<8x128xf32>
    %295 = arith.divf %293, %294 : vector<8x128xf32>
    %296 = math.tanh %290 : vector<8x128xf32>
    %297 = vector.extract_strided_slice %295 {offsets = [0, 32], sizes = [8, 32], strides = [1, 1]} : vector<8x128xf32> to vector<8x32xf32>
    %298 = arith.mulf %297, %283 : vector<8x32xf32>
    %299 = vector.extract_strided_slice %295 {offsets = [0, 0], sizes = [8, 32], strides = [1, 1]} : vector<8x128xf32> to vector<8x32xf32>
    %300 = vector.extract_strided_slice %296 {offsets = [0, 64], sizes = [8, 32], strides = [1, 1]} : vector<8x128xf32> to vector<8x32xf32>
    %301 = arith.mulf %299, %300 : vector<8x32xf32>
    %302 = arith.addf %298, %301 : vector<8x32xf32>
    %303 = vector.extract_strided_slice %295 {offsets = [0, 96], sizes = [8, 32], strides = [1, 1]} : vector<8x128xf32> to vector<8x32xf32>
    %304 = math.tanh %302 : vector<8x32xf32>
    %305 = arith.mulf %303, %304 : vector<8x32xf32>
    %c48_78 = arith.constant 48 : index
    %c0_79 = arith.constant 0 : index
    %306 = vector.load %arg19[%c48_78, %c0_79] : memref<64x32xf32, #tpu.memory_space<vmem>>, vector<8x32xf32>
    tpu.vector_store %arg19[%c48_78, %c0_79], %305 {strides = array<i32>} : memref<64x32xf32, #tpu.memory_space<vmem>>, vector<8x32xf32>,
    %307 = vector.extract_strided_slice %169 {offsets = [56, 0], sizes = [8, 128], strides = [1, 1]} : vector<64x128xf32> to vector<8x128xf32>
    %cst_80 = arith.constant dense<0.000000e+00> : vector<8x128xf32>
    %308 = tpu.matmul %305, %164, %cst_80 {dimension_numbers = #tpu.dot_dimension_numbers<[1], [0], [0], [1], [0, 0, 1, 1], [], []>} : vector<8x32xf32>, vector<32x128xf32>, vector<8x128xf32> -> vector<8x128xf32>
    %309 = arith.addf %307, %308 : vector<8x128xf32>
    %310 = arith.negf %309 : vector<8x128xf32>
    %311 = math.exp %310 : vector<8x128xf32>
    %cst_81 = arith.constant 1.000000e+00 : f32
    %312 = vector.broadcast %cst_81 : f32 to vector<8x128xf32>
    %313 = arith.addf %312, %311 : vector<8x128xf32>
    %314 = arith.divf %312, %313 : vector<8x128xf32>
    %315 = math.tanh %309 : vector<8x128xf32>
    %316 = vector.extract_strided_slice %314 {offsets = [0, 32], sizes = [8, 32], strides = [1, 1]} : vector<8x128xf32> to vector<8x32xf32>
    %317 = arith.mulf %316, %302 : vector<8x32xf32>
    %318 = vector.extract_strided_slice %314 {offsets = [0, 0], sizes = [8, 32], strides = [1, 1]} : vector<8x128xf32> to vector<8x32xf32>
    %319 = vector.extract_strided_slice %315 {offsets = [0, 64], sizes = [8, 32], strides = [1, 1]} : vector<8x128xf32> to vector<8x32xf32>
    %320 = arith.mulf %318, %319 : vector<8x32xf32>
    %321 = arith.addf %317, %320 : vector<8x32xf32>
    %322 = vector.extract_strided_slice %314 {offsets = [0, 96], sizes = [8, 32], strides = [1, 1]} : vector<8x128xf32> to vector<8x32xf32>
    %323 = math.tanh %321 : vector<8x32xf32>
    %324 = arith.mulf %322, %323 : vector<8x32xf32>
    %c56_82 = arith.constant 56 : index
    %c0_83 = arith.constant 0 : index
    %325 = vector.load %arg19[%c56_82, %c0_83] : memref<64x32xf32, #tpu.memory_space<vmem>>, vector<8x32xf32>
    tpu.vector_store %arg19[%c56_82, %c0_83], %324 {strides = array<i32>} : memref<64x32xf32, #tpu.memory_space<vmem>>, vector<8x32xf32>,
    %326 = arith.addf %161, %324 : vector<8x32xf32>
    %327 = arith.addf %158, %321 : vector<8x32xf32>
    %c0_84 = arith.constant 0 : index
    %c0_85 = arith.constant 0 : index
    %328 = memref.load %arg3[%c0_84, %c0_85] : memref<1x1xf32, #tpu.memory_space<smem>>
    %329 = tpu.concatenate %326, %327 in 1 : vector<8x32xf32>, vector<8x32xf32> -> vector<8x64xf32>
    %cst_86 = arith.constant 0.000000e+00 : f32
    %330 = vector.broadcast %cst_86 : f32 to vector<8x64xf32>
    %331 = arith.cmpf oge, %329, %330 : vector<8x64xf32>
    %332 = vector.broadcast %328 : f32 to vector<8x64xf32>
    %333 = arith.mulf %332, %329 : vector<8x64xf32>
    %334 = arith.select %331, %329, %333 : vector<8x64xi1>, vector<8x64xf32>
    %c0_87 = arith.constant 0 : index
    %c0_88 = arith.constant 0 : index
    %335 = vector.load %arg10[%c0_87, %c0_88] : memref<1x64xf32, #tpu.memory_space<vmem>>, vector<1x64xf32>
    %c0_89 = arith.constant 0 : index
    %c0_90 = arith.constant 0 : index
    %336 = vector.load %arg11[%c0_89, %c0_90] : memref<1x64xf32, #tpu.memory_space<vmem>>, vector<1x64xf32>
    %cst_91 = arith.constant dense<0.000000e+00> : vector<64xf32>
    %337 = vector.multi_reduction <add>, %334, %cst_91 [0] : vector<8x64xf32> to vector<64xf32>
    %338 = vector.shape_cast %337 : vector<64xf32> to vector<1x64xf32>
    %cst_92 = arith.constant 8.000000e+00 : f32
    %339 = vector.broadcast %cst_92 : f32 to vector<1x64xf32>
    %340 = arith.divf %338, %339 : vector<1x64xf32>
    %341 = vector.broadcast %340 : vector<1x64xf32> to vector<8x64xf32>
    %342 = arith.subf %334, %341 : vector<8x64xf32>
    %343 = arith.mulf %342, %342 : vector<8x64xf32>
    %cst_93 = arith.constant dense<0.000000e+00> : vector<64xf32>
    %344 = vector.multi_reduction <add>, %343, %cst_93 [0] : vector<8x64xf32> to vector<64xf32>
    %345 = vector.shape_cast %344 : vector<64xf32> to vector<1x64xf32>
    %cst_94 = arith.constant 8.000000e+00 : f32
    %346 = vector.broadcast %cst_94 : f32 to vector<1x64xf32>
    %347 = arith.divf %345, %346 : vector<1x64xf32>
    %348 = vector.broadcast %340 : vector<1x64xf32> to vector<8x64xf32>
    %349 = arith.subf %334, %348 : vector<8x64xf32>
    %350 = vector.broadcast %335 : vector<1x64xf32> to vector<8x64xf32>
    %351 = arith.mulf %350, %349 : vector<8x64xf32>
    %cst_95 = arith.constant 9.99999974E-6 : f32
    %352 = vector.broadcast %cst_95 : f32 to vector<1x64xf32>
    %353 = arith.addf %347, %352 : vector<1x64xf32>
    %354 = math.rsqrt %353 : vector<1x64xf32>
    %355 = vector.broadcast %354 : vector<1x64xf32> to vector<8x64xf32>
    %356 = arith.mulf %351, %355 : vector<8x64xf32>
    %357 = vector.broadcast %336 : vector<1x64xf32> to vector<8x64xf32>
    %358 = arith.addf %356, %357 : vector<8x64xf32>
    %c0_96 = arith.constant 0 : index
    %c0_97 = arith.constant 0 : index
    %359 = vector.load %arg12[%c0_96, %c0_97] : memref<64x64xf32, #tpu.memory_space<vmem>>, vector<64x64xf32>
    %cst_98 = arith.constant dense<0.000000e+00> : vector<8x64xf32>
    %360 = tpu.matmul %358, %359, %cst_98 {dimension_numbers = #tpu.dot_dimension_numbers<[1], [0], [0], [1], [0, 0, 1, 1], [], []>} : vector<8x64xf32>, vector<64x64xf32>, vector<8x64xf32> -> vector<8x64xf32>
    %c0_99 = arith.constant 0 : index
    %c0_100 = arith.constant 0 : index
    %361 = vector.load %arg13[%c0_99, %c0_100] : memref<1x64xf32, #tpu.memory_space<vmem>>, vector<1x64xf32>
    %362 = vector.broadcast %361 : vector<1x64xf32> to vector<8x64xf32>
    %363 = arith.addf %360, %362 : vector<8x64xf32>
    %cst_101 = arith.constant 0.000000e+00 : f32
    %364 = vector.broadcast %cst_101 : f32 to vector<8x64xf32>
    %365 = arith.cmpf oge, %363, %364 : vector<8x64xf32>
    %366 = vector.broadcast %328 : f32 to vector<8x64xf32>
    %367 = arith.mulf %366, %363 : vector<8x64xf32>
    %368 = arith.select %365, %363, %367 : vector<8x64xi1>, vector<8x64xf32>
    %c0_102 = arith.constant 0 : index
    %c0_103 = arith.constant 0 : index
    %369 = vector.load %arg14[%c0_102, %c0_103] : memref<1x64xf32, #tpu.memory_space<vmem>>, vector<1x64xf32>
    %c0_104 = arith.constant 0 : index
    %c0_105 = arith.constant 0 : index
    %370 = vector.load %arg15[%c0_104, %c0_105] : memref<1x64xf32, #tpu.memory_space<vmem>>, vector<1x64xf32>
    %cst_106 = arith.constant dense<0.000000e+00> : vector<64xf32>
    %371 = vector.multi_reduction <add>, %368, %cst_106 [0] : vector<8x64xf32> to vector<64xf32>
    %372 = vector.shape_cast %371 : vector<64xf32> to vector<1x64xf32>
    %cst_107 = arith.constant 8.000000e+00 : f32
    %373 = vector.broadcast %cst_107 : f32 to vector<1x64xf32>
    %374 = arith.divf %372, %373 : vector<1x64xf32>
    %375 = vector.broadcast %374 : vector<1x64xf32> to vector<8x64xf32>
    %376 = arith.subf %368, %375 : vector<8x64xf32>
    %377 = arith.mulf %376, %376 : vector<8x64xf32>
    %cst_108 = arith.constant dense<0.000000e+00> : vector<64xf32>
    %378 = vector.multi_reduction <add>, %377, %cst_108 [0] : vector<8x64xf32> to vector<64xf32>
    %379 = vector.shape_cast %378 : vector<64xf32> to vector<1x64xf32>
    %cst_109 = arith.constant 8.000000e+00 : f32
    %380 = vector.broadcast %cst_109 : f32 to vector<1x64xf32>
    %381 = arith.divf %379, %380 : vector<1x64xf32>
    %382 = vector.broadcast %374 : vector<1x64xf32> to vector<8x64xf32>
    %383 = arith.subf %368, %382 : vector<8x64xf32>
    %384 = vector.broadcast %369 : vector<1x64xf32> to vector<8x64xf32>
    %385 = arith.mulf %384, %383 : vector<8x64xf32>
    %cst_110 = arith.constant 9.99999974E-6 : f32
    %386 = vector.broadcast %cst_110 : f32 to vector<1x64xf32>
    %387 = arith.addf %381, %386 : vector<1x64xf32>
    %388 = math.rsqrt %387 : vector<1x64xf32>
    %389 = vector.broadcast %388 : vector<1x64xf32> to vector<8x64xf32>
    %390 = arith.mulf %385, %389 : vector<8x64xf32>
    %391 = vector.broadcast %370 : vector<1x64xf32> to vector<8x64xf32>
    %392 = arith.addf %390, %391 : vector<8x64xf32>
    %c0_111 = arith.constant 0 : index
    %c0_112 = arith.constant 0 : index
    %393 = vector.load %arg16[%c0_111, %c0_112] : memref<64x4xf32, #tpu.memory_space<vmem>>, vector<64x4xf32>
    %cst_113 = arith.constant dense<0.000000e+00> : vector<8x4xf32>
    %394 = tpu.matmul %392, %393, %cst_113 {dimension_numbers = #tpu.dot_dimension_numbers<[1], [0], [0], [1], [0, 0, 1, 1], [], []>} : vector<8x64xf32>, vector<64x4xf32>, vector<8x4xf32> -> vector<8x4xf32>
    %c0_114 = arith.constant 0 : index
    %c0_115 = arith.constant 0 : index
    %395 = vector.load %arg17[%c0_114, %c0_115] : memref<1x4xf32, #tpu.memory_space<vmem>>, vector<1x4xf32>
    %396 = vector.broadcast %395 : vector<1x4xf32> to vector<8x4xf32>
    %397 = arith.addf %394, %396 : vector<8x4xf32>
    %c0_116 = arith.constant 0 : index
    %c0_117 = arith.constant 0 : index
    %398 = vector.load %arg18[%c0_116, %c0_117] : memref<8x4xf32, #tpu.memory_space<vmem>>, vector<8x4xf32>
    tpu.vector_store %arg18[%c0_116, %c0_117], %397 {strides = array<i32>} : memref<8x4xf32, #tpu.memory_space<vmem>>, vector<8x4xf32>,
    return
  }
}

</mosaic_0001>

<bundles_post_ra>
// kernel: revenue_forecast_lstm_forward.1
= control target key start
LH: loop header
LB: loop body
LE: loop exit
PB: predicated region body
PF: predicated region fallthrough
CT: control target
= control target key end

     0   :  { %s3657_s0 = inlined_call_operand.vmem [shape: f32[64,16], index: 0, kind: input, shape index: {}]   ;;  %s3658_s1 = inlined_call_operand.vmem [shape: f32[2,8,32], index: 1, kind: input, shape index: {}]   ;;  %s3659_s2 = inlined_call_operand.vmem [shape: f32[2,8,32], index: 2, kind: input, shape index: {}]   ;;  %s3660_s3 = inlined_call_operand.<no memory space> [shape: f32[1,1], index: 3, kind: input, shape index: {}]   ;;  %s3661_s4 = inlined_call_operand.vmem [shape: f32[16,128], index: 4, kind: input, shape index: {}]   ;;  %s3662_s5 = inlined_call_operand.vmem [shape: f32[32,128], index: 5, kind: input, shape index: {}]   ;;  %s3663_s6 = inlined_call_operand.vmem [shape: f32[1,128], index: 6, kind: input, shape index: {}]   ;;  %s3664_s7 = inlined_call_operand.vmem [shape: f32[32,128], index: 7, kind: input, shape index: {}]   ;;  %s3665_s8 = inlined_call_operand.vmem [shape: f32[32,128], index: 8, kind: input, shape index: {}]   ;;  %s3666_s9 = inlined_call_operand.vmem [shape: f32[1,128], index: 9, kind: input, shape index: {}]   ;;  %s3667_s10 = inlined_call_operand.vmem [shape: f32[1,64], index: 10, kind: input, shape index: {}]   ;;  %s3668_s11 = inlined_call_operand.hbm [shape: f32[1,64], index: 11, kind: input, shape index: {}]   ;;  %s3669_s12 = inlined_call_operand.vmem [shape: f32[64,64], index: 12, kind: input, shape index: {}]   ;;  %s3670_s13 = inlined_call_operand.vmem [shape: f32[1,64], index: 13, kind: input, shape index: {}]   ;;  %s3671_s14 = inlined_call_operand.vmem [shape: f32[1,64], index: 14, kind: input, shape index: {}]   ;;  %s3672_s15 = inlined_call_operand.vmem [shape: f32[1,64], index: 15, kind: input, shape index: {}]   ;;  %s3673_s16 = inlined_call_operand.vmem [shape: f32[64,4], index: 16, kind: input, shape index: {}]   ;;  %s3674_s17 = inlined_call_operand.vmem [shape: f32[1,4], index: 17, kind: input, shape index: {}]   ;;  %s3675_s18 = inlined_call_operand.vmem [shape: f32[8,4], index: 18, kind: output, shape index: {0}]   ;;  %s3676_s19 = inlined_call_operand.hbm [shape: f32[64,32], index: 19, kind: output, shape index: {1}]  }
   0x1   :  { %3680 = sst [smem:[#allocation10_spill]] %s3657_s0 }
   0x2   :  { %3681 = sst [smem:[#allocation11_spill]] %s3658_s1 }
   0x3   :  { %3682 = sst [smem:[#allocation12_spill]] %s3659_s2 }
   0x4   :  { %3683 = sst [smem:[#allocation13_spill]] %s3660_s3 }
   0x5   :  { %26 = vsyncpa [#allocation5], 0 }
   0x6   :  { %27 = vsyncpa [#allocation6], 0  ;;  %s3068_s0 = smov [#allocation4]   ;;  %s3020_s1 = scalar_lea.hbm %s3668_s11, 16 }
   0x7   :  { %s56_s30 = sshll.u32 %s3068_s0, 4  ;;  %p3021_p0 = scmp.ne.s32.totalorder %s3668_s11, %s3020_s1  ;;  %s57_s30 = int_to_ptr.vmem [resolvable:$true] %s56_s30 }
   0x8   :  { %p3024_p1 = scmp.lt.u32.totalorder %s3020_s1, %s3668_s11 }
   0xa   :  { %p3026_p2 = pnand %p3024_p1, %p3021_p0 }
   0xc   :  { %3029 = shalt.err (!%p3026_p2)
}
   0xd   :  { %s3030_s25 = scalar_lea.vmem %s57_s30, 16  ;;  %s3034_s3 = scalar_lea.vmem %s57_s30, 32 }
   0xe   :  { %p3031_p3 = scmp.ne.s32.totalorder %s57_s30, %s3030_s25  ;;  %p3035_p4 = scmp.lt.s32.totalorder %s57_s30, %s57_s30 }
   0xf   :  { %p3036_p5 = scmp.lt.s32.totalorder %s3034_s3, %s3030_s25 }
  0x11   :  { %p3037_p6 = por %p3036_p5, %p3035_p4 }
  0x13   :  { %p3038_p7 = pnand %p3037_p6, %p3031_p3 }
  0x15   :  { %3041 = shalt.err (!%p3038_p7)
}
  0x16   :  { %59 = dma.hbm_to_vmem [thread:$0]  %s3668_s11, 16, %s57_s30, [#allocation5]  }
  0x17   :  { %3064 = dma.done.wait [#allocation5], 16  }
  0x18   :  { %3065 = vsyncadd [#allocation5], 4294967280  ;;  %v3069_v0 = vmov 0.0|0.0   ;;  %vm3070_vm0 = vmmov 0   ;;  %v3071_v1 = vmov 0.0   ;;  %vm96_vm1 = vcmask 130048  }
  0x19   :  { %2751 = vmatprep.subr.bf16.mxu1 %v3069_v0  ;;  %2521 = vmatprep.mubr.msk.f32.mxu1 %vm3070_vm0, %v3071_v1  ;;  %v75_v2 = vld [vmem:[%s3661_s4] sm:$0xff]  ;;  %v76_v3 = vld [vmem:[%s3661_s4 + $0x8] sm:$0xff]  ;;  %s3684_s23 = sld [smem:[#allocation10_spill]]  ;;  %v79_v9 = vld [vmem:[%s3662_s5 + $0x10] sm:$0xff]  ;;  %s3685_s29 = sld [smem:[#allocation11_spill]]  ;;  %vm228_vm2 = vcmask 261120  }
  0x1a   :  { %v77_v4 = vld [vmem:[%s3662_s5] sm:$0xff]  ;;  %v2747_v5 = vpack.c.bf16 %v76_v3, %v75_v2  ;;  %v78_v6 = vld [vmem:[%s3662_s5 + $0x8] sm:$0xff]  ;;  %v80_v10 = vld [vmem:[%s3662_s5 + $0x18] sm:$0xff]  ;;  %s3072_s11 = smov 64   ;;  %s3686_s1 = sld [smem:[#allocation12_spill]]  ;;  %vm2041_vm3 = vcmask 523264  }
  0x1b   :  { %v3207_v8 = vpack.c.bf16 %v78_v6, %v77_v4  ;;  %v3220_v12 = vpack.c.bf16 %v80_v10, %v79_v9  ;;  %v3244_v14 = vld [vmem:[%s3663_s6] ss:$0 sm:$0xff]  ;;  %s3073_s22 = smov 32   ;;  %s3074_s30 = smov [#allocation7]  }
  0x1c   :  { %2748 = vmatprep.subr.bf16.mxu0 %v2747_v5 }
  0x1d   :  { %2753 = vmatpush3.bf16.msra.mxu1 %v3207_v8  ;;  %2750 = vmatpush3.bf16.msra.mxu0 %v2747_v5 }
  0x1e   :  { %2754 = vmatprep.subr.bf16.mxu1 %v3069_v0  ;;  %2763 = vmatprep.subr.bf16.mxu0 %v3069_v0 }
  0x1f   :  { %v82_v7 = vld [vmem:[%s3684_s23] sm:$0xff]  ;;  %v83_v11 = vld [vmem:[%s3684_s23 + $0x8] sm:$0xff]  ;;  %v84_v51 = vld [vmem:[%s3684_s23 + $0x10] sm:$0xff] }
  0x20   :  { %2501 = vmatprep.mubr.msk.f32.mxu0 %vm96_vm1, %v82_v7  ;;  %v226_v13 = vld [vmem:[%s3685_s29] sm:$0xff]  ;;  %v85_v52 = vld [vmem:[%s3684_s23 + $0x18] sm:$0xff]  ;;  %v87_v54 = vld [vmem:[%s3684_s23 + $0x28] sm:$0xff] }
  0x21   :  { %2502 = vmatmul.mubr.msk.f32.vlgmr.msra.gmra.mrb[0].mxu0 %vm96_vm1, %v83_v11  ;;  %2756 = vmatpush3.bf16.msra.mxu1 %v3220_v12  ;;  %v227_v22 = vld [vmem:[%s3686_s1] sm:$0xff]  ;;  %v88_v55 = vld [vmem:[%s3684_s23 + $0x30] sm:$0xff]  ;;  %v89_v56 = vld [vmem:[%s3684_s23 + $0x38] sm:$0xff] }
  0x22   :  { %2765 = vmatpush3.bf16.msra.mxu0 %v3207_v8  ;;  %2757 = vmatprep.subr.bf16.mxu1 %v3069_v0  ;;  %v86_v53 = vld [vmem:[%s3684_s23 + $0x20] sm:$0xff] }
  0x23   :  { %2766 = vmatprep.subr.bf16.mxu0 %v3069_v0  ;;  %2504 = vmatprep.mubr.msk.f32.mxu0 %vm96_vm1, %v84_v51 }
  0x24   :  { %2522 = vmatmul.mubr.msk.f32.vlgmr.msra.gmra.mrb[0].mxu1 %vm228_vm2, %v226_v13 }
  0x25   :  { %2759 = vmatpush3.bf16.msra.mxu1 %v3207_v8  ;;  %2532 = vmatprep.mubr.msk.f32.mxu1 %vm3070_vm0, %v3071_v1 }
  0x26   :  { %2760 = vmatprep.subr.bf16.mxu1 %v3069_v0  ;;  %2768 = vmatpush3.bf16.msra.mxu0 %v3220_v12 }
  0x27   :  { %2775 = vmatprep.subr.bf16.mxu0 %v3069_v0  ;;  %2505 = vmatmul.mubr.msk.f32.gmra.mrb[2].mxu0 %vm96_vm1, %v85_v52 }
  0x28   :  { %2507 = vmatprep.mubr.msk.f32.mxu0 %vm96_vm1, %v86_v53 }
  0x29   :  { %2762 = vmatpush3.bf16.msra.mxu1 %v3220_v12 }
  0x2a   :  { %2769 = vmatprep.subr.bf16.mxu1 %v3069_v0 }
  0x2b   :  { %2508 = vmatmul.mubr.msk.f32.gmra.mrb[4].mxu0 %vm96_vm1, %v87_v54 }
  0x2c   :  { %2510 = vmatprep.mubr.msk.f32.mxu0 %vm96_vm1, %v88_v55 }
  0x2f   :  { %2511 = vmatmul.mubr.msk.f32.gmra.mrb[6].mxu0 %vm96_vm1, %v89_v56 }
  0x30   :  { %2543 = vmatprep.mubr.msk.f32.mxu0 %vm3070_vm0, %v3071_v1 }
  0xf4   :  { %v2503_v15 = vpop.f32.mrb[0].mxu0 }
  0xf5   :  { %v187_v16 = vpop.f32.mrb[1].mxu0  ;;  %v193_v37 = vadd.f32 %v2503_v15, %v3244_v14 }
  0xf6   :  { %v188_v17 = vadd.f32 %v3244_v14, %v187_v16 }
  0xf7   :  { %v298_v18 = vpop.f32.mrb[0].mxu1 }
  0xf8   :  { %v302_v19 = vadd.f32 %v298_v18, %v188_v17  ;;  %v2523_v20 = vpop.f32.mrb[1].mxu1 }
  0xfa   :  { %2888 = vtanh.f32 %v302_v19  ;;  %v2327_v23 = vmul.f32 -1.442695, %v302_v19  ;;  %v2506_v60 = vpop.f32.mrb[2].mxu0 }
  0xfb   :  { %v197_v61 = vpop.f32.mrb[3].mxu0 }
  0xfc   :  { %2890 = vpow2.f32 %v2327_v23  ;;  %v198_v5 = vadd.f32 %v3244_v14, %v197_v61 }
  0xfe   :  { %v3294_v62 = vpop.f32.mrb[4].mxu0 }
  0xff   :  { %v3296_v63 = vpop.f32.mrb[5].mxu0 }
 0x102   :  { %v3298_v2 = vpop.f32.mrb[6].mxu0 }
 0x103   :  { %v3300_v3 = vpop.f32.mrb[7].mxu0 }
 0x104   :  { %v2889_v21 = vpop.eup %2888 }
 0x105   :  { %316 = vrot.lane.b32.xlu0 %v2889_v21, %s3072_s11 }
 0x106   :  { %v2891_v24 = vpop.eup %2890 }
 0x107   :  { %v306_v25 = vadd.f32 1.0, %v2891_v24 }
 0x109   :  { %311 = vrot.lane.b32.xlu0 %v227_v22, %s3073_s22  ;;  %2892 = vrcp.f32 %v306_v25 }
 0x113   :  { %v2893_v26 = vpop.eup %2892 }
 0x177   :  { %v317_v27 = vpop.permute.xlu0 %316 }
 0x178   :  { %v319_v28 = vmul.f32 %v2893_v26, %v317_v27 }
 0x17a   :  { %321 = vrot.lane.b32.xlu1 %v319_v28, %s3073_s22 }
 0x17b   :  { %v312_v29 = vpop.permute.xlu0 %311 }
 0x17c   :  { %v314_v30 = vmul.f32 %v2893_v26, %v312_v29 }
 0x1ec   :  { %v322_v31 = vpop.permute.xlu1 %321 }
 0x1ed   :  { %v324_v32 = vadd.f32 %v322_v31, %v314_v30 }
 0x1ef   :  { %2894 = vtanh.f32 %v324_v32 }
 0x1f9   :  { %v2895_v33 = vpop.eup %2894 }
 0x1fa   :  { %327 = vrot.lane.b32.xlu1 %v2895_v33, %s3072_s11 }
 0x26c   :  { %v328_v34 = vpop.permute.xlu1 %327 }
 0x26d   :  { %v330_v35 = vmul.f32 %v2893_v26, %v328_v34  ;;  %v203_v26 = vadd.f32 %v2506_v60, %v3244_v14 }
 0x26f   :  { %332 = vrot.lane.b32.xlu0 %v330_v35, %s3073_s22 }
 0x2e1   :  { %v333_v36 = vpop.permute.xlu0 %332 }
 0x2e2   :  { %335 = vst.msk [vmem:[#allocation2] sm:$0xff] %vm228_vm2, %v333_v36  ;;  %2533 = vmatmul.mubr.msk.f32.vlgmr.msra.gmra.mrb[2].mxu1 %vm228_vm2, %v333_v36 }
 0x2e3   :  { %2771 = vmatpush3.bf16.msra.mxu1 %v3207_v8  ;;  %2554 = vmatprep.mubr.msk.f32.mxu1 %vm3070_vm0, %v3071_v1 }
 0x2e4   :  { %2772 = vmatprep.subr.bf16.mxu1 %v3069_v0 }
 0x2e7   :  { %2774 = vmatpush3.bf16.msra.mxu1 %v3220_v12 }
 0x2e8   :  { %2781 = vmatprep.subr.bf16.mxu1 %v3069_v0 }
 0x3b5   :  { %v404_v38 = vpop.f32.mrb[2].mxu1 }
 0x3b6   :  { %v408_v39 = vadd.f32 %v404_v38, %v193_v37  ;;  %v2534_v40 = vpop.f32.mrb[3].mxu1 }
 0x3b8   :  { %2896 = vtanh.f32 %v408_v39  ;;  %v2329_v42 = vmul.f32 -1.442695, %v408_v39 }
 0x3ba   :  { %2898 = vpow2.f32 %v2329_v42 }
 0x3c2   :  { %v2897_v41 = vpop.eup %2896 }
 0x3c3   :  { %418 = vrot.lane.b32.xlu1 %v2897_v41, %s3072_s11 }
 0x3c4   :  { %v2899_v43 = vpop.eup %2898 }
 0x3c5   :  { %v412_v44 = vadd.f32 1.0, %v2899_v43 }
 0x3c7   :  { %2900 = vrcp.f32 %v412_v44  ;;  %v208_v44 = vadd.f32 %v3244_v14, %v3296_v63  ;;  %v213_v63 = vadd.f32 %v3294_v62, %v3244_v14 }
 0x3d1   :  { %v2901_v45 = vpop.eup %2900 }
 0x3d2   :  { %v416_v48 = vmul.f32 %v2901_v45, %v324_v32 }
 0x435   :  { %v419_v46 = vpop.permute.xlu1 %418 }
 0x436   :  { %v421_v47 = vmul.f32 %v2901_v45, %v419_v46 }
 0x438   :  { %423 = vrot.lane.b32.xlu0 %v421_v47, %s3073_s22 }
 0x4aa   :  { %v424_v49 = vpop.permute.xlu0 %423 }
 0x4ab   :  { %v426_v50 = vadd.f32 %v424_v49, %v416_v48 }
 0x4ad   :  { %2902 = vtanh.f32 %v426_v50 }
 0x4b7   :  { %v2903_v57 = vpop.eup %2902 }
 0x4b8   :  { %429 = vrot.lane.b32.xlu1 %v2903_v57, %s3072_s11 }
 0x52a   :  { %v430_v58 = vpop.permute.xlu1 %429 }
 0x52b   :  { %v432_v59 = vmul.f32 %v2901_v45, %v430_v58 }
 0x52d   :  { %434 = vrot.lane.b32.xlu0 %v432_v59, %s3073_s22 }
 0x59f   :  { %v435_v4 = vpop.permute.xlu0 %434 }
 0x5a0   :  { %437 = vst.msk [vmem:[#allocation2 + $0x8] sm:$0xff] %vm228_vm2, %v435_v4  ;;  %2544 = vmatmul.mubr.msk.f32.vlgmr.msra.gmra.mrb[8].mxu0 %vm228_vm2, %v435_v4 }
 0x5a1   :  { %2777 = vmatpush3.bf16.msra.mxu0 %v3207_v8  ;;  %2565 = vmatprep.mubr.msk.f32.mxu0 %vm3070_vm0, %v3071_v1 }
 0x5a2   :  { %2778 = vmatprep.subr.bf16.mxu0 %v3069_v0 }
 0x5a5   :  { %2780 = vmatpush3.bf16.msra.mxu0 %v3220_v12 }
 0x5a6   :  { %2787 = vmatprep.subr.bf16.mxu0 %v3069_v0 }
 0x673   :  { %v506_v6 = vpop.f32.mrb[8].mxu0 }
 0x674   :  { %v510_v7 = vadd.f32 %v506_v6, %v198_v5  ;;  %v2545_v9 = vpop.f32.mrb[9].mxu0 }
 0x676   :  { %2904 = vtanh.f32 %v510_v7  ;;  %v2331_v11 = vmul.f32 -1.442695, %v510_v7 }
 0x678   :  { %2906 = vpow2.f32 %v2331_v11 }
 0x680   :  { %v2905_v10 = vpop.eup %2904 }
 0x681   :  { %520 = vrot.lane.b32.xlu1 %v2905_v10, %s3072_s11 }
 0x682   :  { %v2907_v13 = vpop.eup %2906 }
 0x683   :  { %v514_v15 = vadd.f32 1.0, %v2907_v13 }
 0x685   :  { %2908 = vrcp.f32 %v514_v15 }
 0x68f   :  { %v2909_v16 = vpop.eup %2908 }
 0x690   :  { %v518_v19 = vmul.f32 %v2909_v16, %v426_v50 }
 0x6f3   :  { %v521_v17 = vpop.permute.xlu1 %520 }
 0x6f4   :  { %v523_v18 = vmul.f32 %v2909_v16, %v521_v17  ;;  %v1050_v17 = vld [vmem:[%s3664_s7] sm:$0xff] }
 0x6f6   :  { %525 = vrot.lane.b32.xlu0 %v523_v18, %s3073_s22  ;;  %v1051_v18 = vld [vmem:[%s3664_s7 + $0x8] sm:$0xff] }
 0x768   :  { %v526_v20 = vpop.permute.xlu0 %525 }
 0x769   :  { %v528_v21 = vadd.f32 %v526_v20, %v518_v19  ;;  %v2799_v19 = vpack.c.bf16 %v1051_v18, %v1050_v17 }
 0x76b   :  { %2910 = vtanh.f32 %v528_v21 }
 0x775   :  { %v2911_v22 = vpop.eup %2910 }
 0x776   :  { %531 = vrot.lane.b32.xlu1 %v2911_v22, %s3072_s11 }
 0x7e8   :  { %v532_v23 = vpop.permute.xlu1 %531 }
 0x7e9   :  { %v534_v24 = vmul.f32 %v2909_v16, %v532_v23  ;;  %v1052_v23 = vld [vmem:[%s3664_s7 + $0x10] sm:$0xff] }
 0x7eb   :  { %536 = vrot.lane.b32.xlu0 %v534_v24, %s3073_s22  ;;  %v1053_v24 = vld [vmem:[%s3664_s7 + $0x18] sm:$0xff] }
 0x85d   :  { %v537_v25 = vpop.permute.xlu0 %536 }
 0x85e   :  { %539 = vst.msk [vmem:[#allocation2 + $0x10] sm:$0xff] %vm228_vm2, %v537_v25  ;;  %2555 = vmatmul.mubr.msk.f32.vlgmr.msra.gmra.mrb[4].mxu1 %vm228_vm2, %v537_v25  ;;  %v2803_v25 = vpack.c.bf16 %v1053_v24, %v1052_v23 }
 0x85f   :  { %2783 = vmatpush3.bf16.msra.mxu1 %v3207_v8  ;;  %2576 = vmatprep.mubr.msk.f32.mxu1 %vm3070_vm0, %v3071_v1 }
 0x860   :  { %2784 = vmatprep.subr.bf16.mxu1 %v3069_v0 }
 0x863   :  { %2786 = vmatpush3.bf16.msra.mxu1 %v3220_v12 }
 0x864   :  { %2793 = vmatprep.subr.bf16.mxu1 %v3069_v0 }
 0x931   :  { %v608_v27 = vpop.f32.mrb[4].mxu1 }
 0x932   :  { %v612_v28 = vadd.f32 %v608_v27, %v203_v26  ;;  %v2556_v29 = vpop.f32.mrb[5].mxu1  ;;  %v1059_v27 = vld [vmem:[#allocation2] sm:$0xff] }
 0x933   :  { %v1061_v29 = vld [vmem:[#allocation2 + $0x10] sm:$0xff] }
 0x934   :  { %2912 = vtanh.f32 %v612_v28  ;;  %v2333_v31 = vmul.f32 -1.442695, %v612_v28  ;;  %v1060_v28 = vld [vmem:[#allocation2 + $0x8] sm:$0xff] }
 0x936   :  { %2914 = vpow2.f32 %v2333_v31 }
 0x93e   :  { %v2913_v30 = vpop.eup %2912 }
 0x93f   :  { %622 = vrot.lane.b32.xlu1 %v2913_v30, %s3072_s11 }
 0x940   :  { %v2915_v32 = vpop.eup %2914 }
 0x941   :  { %v616_v33 = vadd.f32 1.0, %v2915_v32 }
 0x943   :  { %2916 = vrcp.f32 %v616_v33  ;;  %v218_v33 = vadd.f32 %v3244_v14, %v3300_v3 }
 0x94d   :  { %v2917_v34 = vpop.eup %2916 }
 0x94e   :  { %v620_v37 = vmul.f32 %v2917_v34, %v528_v21 }
 0x9b1   :  { %v623_v35 = vpop.permute.xlu1 %622 }
 0x9b2   :  { %v625_v36 = vmul.f32 %v2917_v34, %v623_v35 }
 0x9b4   :  { %627 = vrot.lane.b32.xlu0 %v625_v36, %s3073_s22 }
 0xa26   :  { %v628_v38 = vpop.permute.xlu0 %627 }
 0xa27   :  { %v630_v39 = vadd.f32 %v628_v38, %v620_v37 }
 0xa29   :  { %2918 = vtanh.f32 %v630_v39 }
 0xa33   :  { %v2919_v40 = vpop.eup %2918 }
 0xa34   :  { %633 = vrot.lane.b32.xlu1 %v2919_v40, %s3072_s11 }
 0xaa6   :  { %v634_v41 = vpop.permute.xlu1 %633 }
 0xaa7   :  { %v636_v42 = vmul.f32 %v2917_v34, %v634_v41 }
 0xaa9   :  { %638 = vrot.lane.b32.xlu0 %v636_v42, %s3073_s22 }
 0xb1b   :  { %v639_v43 = vpop.permute.xlu0 %638 }
 0xb1c   :  { %641 = vst.msk [vmem:[#allocation2 + $0x18] sm:$0xff] %vm228_vm2, %v639_v43  ;;  %2566 = vmatmul.mubr.msk.f32.vlgmr.msra.gmra.mrb[10].mxu0 %vm228_vm2, %v639_v43 }
 0xb1d   :  { %2789 = vmatpush3.bf16.msra.mxu0 %v3207_v8  ;;  %2587 = vmatprep.mubr.msk.f32.mxu0 %vm3070_vm0, %v3071_v1 }
 0xb1e   :  { %2790 = vmatprep.subr.bf16.mxu0 %v3069_v0 }
 0xb21   :  { %2792 = vmatpush3.bf16.msra.mxu0 %v3220_v12 }
 0xb22   :  { %2800 = vmatprep.subr.bf16.mxu0 %v2799_v19 }
 0xb23   :  { %v1062_v30 = vld [vmem:[#allocation2 + $0x18] sm:$0xff] }
 0xbef   :  { %v710_v45 = vpop.f32.mrb[10].mxu0 }
 0xbf0   :  { %v714_v46 = vadd.f32 %v710_v45, %v208_v44  ;;  %v2567_v47 = vpop.f32.mrb[11].mxu0 }
 0xbf2   :  { %2920 = vtanh.f32 %v714_v46  ;;  %v2335_v49 = vmul.f32 -1.442695, %v714_v46 }
 0xbf4   :  { %2922 = vpow2.f32 %v2335_v49 }
 0xbfc   :  { %v2921_v48 = vpop.eup %2920 }
 0xbfd   :  { %724 = vrot.lane.b32.xlu1 %v2921_v48, %s3072_s11 }
 0xbfe   :  { %v2923_v50 = vpop.eup %2922 }
 0xbff   :  { %v718_v51 = vadd.f32 1.0, %v2923_v50 }
 0xc01   :  { %2924 = vrcp.f32 %v718_v51 }
 0xc0b   :  { %v2925_v52 = vpop.eup %2924 }
 0xc0c   :  { %v722_v55 = vmul.f32 %v2925_v52, %v630_v39 }
 0xc6f   :  { %v725_v53 = vpop.permute.xlu1 %724 }
 0xc70   :  { %v727_v54 = vmul.f32 %v2925_v52, %v725_v53  ;;  %v1054_v53 = vld [vmem:[%s3665_s8] sm:$0xff] }
 0xc72   :  { %729 = vrot.lane.b32.xlu0 %v727_v54, %s3073_s22  ;;  %v1055_v54 = vld [vmem:[%s3665_s8 + $0x8] sm:$0xff] }
 0xce4   :  { %v730_v56 = vpop.permute.xlu0 %729 }
 0xce5   :  { %v732_v57 = vadd.f32 %v730_v56, %v722_v55  ;;  %v3400_v55 = vpack.c.bf16 %v1055_v54, %v1054_v53  ;;  %v1056_v56 = vld [vmem:[%s3665_s8 + $0x10] sm:$0xff] }
 0xce7   :  { %2926 = vtanh.f32 %v732_v57 }
 0xcf1   :  { %v2927_v58 = vpop.eup %2926 }
 0xcf2   :  { %735 = vrot.lane.b32.xlu1 %v2927_v58, %s3072_s11 }
 0xd64   :  { %v736_v59 = vpop.permute.xlu1 %735 }
 0xd65   :  { %v738_v60 = vmul.f32 %v2925_v52, %v736_v59 }
 0xd67   :  { %740 = vrot.lane.b32.xlu0 %v738_v60, %s3073_s22 }
 0xdd9   :  { %v741_v61 = vpop.permute.xlu0 %740 }
 0xdda   :  { %743 = vst.msk [vmem:[#allocation2 + $0x20] sm:$0xff] %vm228_vm2, %v741_v61  ;;  %2577 = vmatmul.mubr.msk.f32.vlgmr.msra.gmra.mrb[6].mxu1 %vm228_vm2, %v741_v61  ;;  %v2352_v61 = vld [vmem:[%s3686_s1 + $0x8] sm:$0xff] }
 0xddb   :  { %2795 = vmatpush3.bf16.msra.mxu1 %v3207_v8  ;;  %2598 = vmatprep.mubr.msk.f32.mxu1 %vm3070_vm0, %v3071_v1 }
 0xddc   :  { %2796 = vmatprep.subr.bf16.mxu1 %v3069_v0 }
 0xddf   :  { %2798 = vmatpush3.bf16.msra.mxu1 %v3220_v12 }
 0xde0   :  { %2807 = vmatprep.subr.bf16.mxu1 %v3069_v0 }
 0xde1   :  { %v1063_v31 = vld [vmem:[#allocation2 + $0x20] sm:$0xff] }
 0xead   :  { %v812_v4 = vpop.f32.mrb[6].mxu1 }
 0xeae   :  { %v816_v5 = vadd.f32 %v812_v4, %v213_v63  ;;  %v2578_v6 = vpop.f32.mrb[7].mxu1  ;;  %v2351_v4 = vld [vmem:[%s3685_s29 + $0x8] sm:$0xff] }
 0xeaf   :  { %v223_v6 = vadd.f32 %v3298_v2, %v3244_v14 }
 0xeb0   :  { %2928 = vtanh.f32 %v816_v5  ;;  %v2337_v8 = vmul.f32 -1.442695, %v816_v5 }
 0xeb2   :  { %2930 = vpow2.f32 %v2337_v8 }
 0xeba   :  { %v2929_v7 = vpop.eup %2928 }
 0xebb   :  { %826 = vrot.lane.b32.xlu1 %v2929_v7, %s3072_s11 }
 0xebc   :  { %v2931_v9 = vpop.eup %2930 }
 0xebd   :  { %v820_v10 = vadd.f32 1.0, %v2931_v9 }
 0xebf   :  { %2932 = vrcp.f32 %v820_v10  ;;  %v3443_v10 = vld [vmem:[%s3666_s9] ss:$0 sm:$0xff] }
 0xec9   :  { %v2933_v11 = vpop.eup %2932 }
 0xeca   :  { %v824_v15 = vmul.f32 %v2933_v11, %v732_v57  ;;  %v1057_v57 = vld [vmem:[%s3665_s8 + $0x18] sm:$0xff]  ;;  %s3687_s8 = sld [smem:[#allocation13_spill]] }
 0xecb   :  { %v3410_v58 = vpack.c.bf16 %v1057_v57, %v1056_v56 }
 0xf2d   :  { %v827_v13 = vpop.permute.xlu1 %826 }
 0xf2e   :  { %v829_v12 = vmul.f32 %v2933_v11, %v827_v13 }
 0xf30   :  { %831 = vrot.lane.b32.xlu0 %v829_v12, %s3073_s22 }
 0xfa2   :  { %v832_v16 = vpop.permute.xlu0 %831 }
 0xfa3   :  { %v834_v62 = vadd.f32 %v832_v16, %v824_v15 }
 0xfa5   :  { %2934 = vtanh.f32 %v834_v62 }
 0xfaf   :  { %v2935_v20 = vpop.eup %2934 }
 0xfb0   :  { %837 = vrot.lane.b32.xlu1 %v2935_v20, %s3072_s11 }
0x1022   :  { %v838_v21 = vpop.permute.xlu1 %837 }
0x1023   :  { %v840_v22 = vmul.f32 %v2933_v11, %v838_v21 }
0x1025   :  { %842 = vrot.lane.b32.xlu0 %v840_v22, %s3073_s22 }
0x1097   :  { %v843_v26 = vpop.permute.xlu0 %842 }
0x1098   :  { %845 = vst.msk [vmem:[#allocation2 + $0x28] sm:$0xff] %vm228_vm2, %v843_v26  ;;  %2588 = vmatmul.mubr.msk.f32.vlgmr.msra.gmra.mrb[12].mxu0 %vm228_vm2, %v843_v26 }
0x1099   :  { %2802 = vmatpush3.bf16.msra.mxu0 %v2799_v19  ;;  %2609 = vmatprep.mubr.msk.f32.mxu0 %vm228_vm2, %v1059_v27 }
0x109a   :  { %2804 = vmatprep.subr.bf16.mxu0 %v2803_v25 }
0x109d   :  { %2806 = vmatpush3.bf16.msra.mxu0 %v2803_v25 }
0x109e   :  { %2819 = vmatprep.subr.bf16.mxu0 %v3069_v0 }
0x109f   :  { %v1064_v32 = vld [vmem:[#allocation2 + $0x28] sm:$0xff] }
0x10a0   :  { %2610 = vmatmul.mubr.msk.f32.vlgmr.msra.gmra.mrb[14].mxu0 %vm228_vm2, %v1060_v28 }
0x10a1   :  { %2612 = vmatprep.mubr.msk.f32.mxu0 %vm228_vm2, %v1061_v29  ;;  %2821 = vmatpush3.bf16.msra.mxu0 %v3400_v55 }
0x10a2   :  { %2822 = vmatprep.subr.bf16.mxu0 %v3069_v0 }
0x10a4   :  { %2613 = vmatmul.mubr.msk.f32.gmra.mrb[16].mxu0 %vm228_vm2, %v1062_v30 }
0x10a5   :  { %2615 = vmatprep.mubr.msk.f32.mxu0 %vm228_vm2, %v1063_v31  ;;  %2824 = vmatpush3.bf16.msra.mxu0 %v3410_v58 }
0x10a6   :  { %2831 = vmatprep.subr.bf16.mxu0 %v3069_v0 }
0x10a8   :  { %2616 = vmatmul.mubr.msk.f32.gmra.mrb[18].mxu0 %vm228_vm2, %v1064_v32 }
0x116b   :  { %v914_v34 = vpop.f32.mrb[12].mxu0 }
0x116c   :  { %v918_v35 = vadd.f32 %v914_v34, %v218_v33  ;;  %v2589_v36 = vpop.f32.mrb[13].mxu0 }
0x116e   :  { %2936 = vtanh.f32 %v918_v35  ;;  %v2339_v44 = vmul.f32 -1.442695, %v918_v35 }
0x1170   :  { %2938 = vpow2.f32 %v2339_v44 }
0x1173   :  { %v3378_v37 = vpop.f32.mrb[14].mxu0 }
0x1174   :  { %v1163_v38 = vpop.f32.mrb[15].mxu0 }
0x1175   :  { %v1164_v11 = vadd.f32 %v3443_v10, %v1163_v38 }
0x1177   :  { %v3380_v39 = vpop.f32.mrb[16].mxu0 }
0x1178   :  { %v2937_v40 = vpop.eup %2936  ;;  %v3382_v41 = vpop.f32.mrb[17].mxu0 }
0x1179   :  { %928 = vrot.lane.b32.xlu1 %v2937_v40, %s3072_s11 }
0x117a   :  { %v2939_v3 = vpop.eup %2938 }
0x117b   :  { %v3385_v42 = vpop.f32.mrb[18].mxu0  ;;  %v922_v45 = vadd.f32 1.0, %v2939_v3 }
0x117c   :  { %v3387_v43 = vpop.f32.mrb[19].mxu0 }
0x117d   :  { %2940 = vrcp.f32 %v922_v45  ;;  %v1169_v45 = vadd.f32 %v3378_v37, %v3443_v10 }
0x1187   :  { %v2941_v46 = vpop.eup %2940 }
0x1188   :  { %v926_v49 = vmul.f32 %v2941_v46, %v834_v62 }
0x11eb   :  { %v929_v47 = vpop.permute.xlu1 %928 }
0x11ec   :  { %v931_v48 = vmul.f32 %v2941_v46, %v929_v47 }
0x11ee   :  { %933 = vrot.lane.b32.xlu0 %v931_v48, %s3073_s22 }
0x1260   :  { %v934_v50 = vpop.permute.xlu0 %933 }
0x1261   :  { %v3390_v51 = vadd.f32 %v934_v50, %v926_v49 }
0x1263   :  { %2942 = vtanh.f32 %v3390_v51 }
0x126d   :  { %v2943_v52 = vpop.eup %2942 }
0x126e   :  { %939 = vrot.lane.b32.xlu1 %v2943_v52, %s3072_s11 }
0x12e0   :  { %v940_v59 = vpop.permute.xlu1 %939 }
0x12e1   :  { %v942_v60 = vmul.f32 %v2941_v46, %v940_v59 }
0x12e3   :  { %944 = vrot.lane.b32.xlu0 %v942_v60, %s3073_s22 }
0x12e7   :  { %1288 = vrot.lane.b32.xlu0 %v2352_v61, %s3073_s22 }
0x1355   :  { %v945_v63 = vpop.permute.xlu0 %944 }
0x1356   :  { %947 = vst.msk [vmem:[#allocation2 + $0x30] sm:$0xff] %vm228_vm2, %v945_v63  ;;  %2599 = vmatmul.mubr.msk.f32.vlgmr.msra.gmra.mrb[8].mxu1 %vm228_vm2, %v945_v63 }
0x1357   :  { %2809 = vmatpush3.bf16.msra.mxu1 %v3400_v55  ;;  %2629 = vmatprep.mubr.msk.f32.mxu1 %vm3070_vm0, %v3071_v1 }
0x1358   :  { %2810 = vmatprep.subr.bf16.mxu1 %v3069_v0 }
0x1359   :  { %v1289_v20 = vpop.permute.xlu0 %1288 }
0x135b   :  { %2812 = vmatpush3.bf16.msra.mxu1 %v3410_v58 }
0x135c   :  { %2813 = vmatprep.subr.bf16.mxu1 %v3069_v0 }
0x135d   :  { %v1065_v5 = vld [vmem:[#allocation2 + $0x30] sm:$0xff] }
0x135e   :  { %2630 = vmatmul.mubr.msk.f32.vlgmr.msra.gmra.mrb[10].mxu1 %vm228_vm2, %v2351_v4  ;;  %2618 = vmatprep.mubr.msk.f32.mxu0 %vm228_vm2, %v1065_v5 }
0x135f   :  { %2815 = vmatpush3.bf16.msra.mxu1 %v3400_v55  ;;  %2640 = vmatprep.mubr.msk.f32.mxu1 %vm3070_vm0, %v3071_v1 }
0x1360   :  { %2816 = vmatprep.subr.bf16.mxu1 %v3069_v0 }
0x1363   :  { %2818 = vmatpush3.bf16.msra.mxu1 %v3410_v58 }
0x1364   :  { %2825 = vmatprep.subr.bf16.mxu1 %v3069_v0 }
0x1429   :  { %v1016_v7 = vpop.f32.mrb[8].mxu1 }
0x142a   :  { %v1020_v8 = vadd.f32 %v1016_v7, %v223_v6  ;;  %v2600_v9 = vpop.f32.mrb[9].mxu1 }
0x142b   :  { %v1174_v9 = vadd.f32 %v3443_v10, %v3382_v41 }
0x142c   :  { %v2341_v26 = vmul.f32 -1.442695, %v1020_v8 }
0x1431   :  { %v1275_v13 = vpop.f32.mrb[10].mxu1 }
0x1432   :  { %v1279_v12 = vadd.f32 %v1275_v13, %v1164_v11  ;;  %v2631_v15 = vpop.f32.mrb[11].mxu1 }
0x1434   :  { %2944 = vtanh.f32 %v1279_v12  ;;  %v2354_v62 = vmul.f32 -1.442695, %v1279_v12 }
0x1436   :  { %2946 = vpow2.f32 %v2354_v62 }
0x143e   :  { %v2945_v16 = vpop.eup %2944 }
0x143f   :  { %1293 = vrot.lane.b32.xlu1 %v2945_v16, %s3072_s11 }
0x1440   :  { %v2947_v14 = vpop.eup %2946 }
0x1441   :  { %v1283_v2 = vadd.f32 1.0, %v2947_v14 }
0x1443   :  { %2948 = vrcp.f32 %v1283_v2 }
0x144d   :  { %v2949_v17 = vpop.eup %2948 }
0x144e   :  { %v1291_v21 = vmul.f32 %v2949_v17, %v1289_v20 }
0x14b1   :  { %v1294_v18 = vpop.permute.xlu1 %1293 }
0x14b2   :  { %v1296_v19 = vmul.f32 %v2949_v17, %v1294_v18 }
0x14b4   :  { %1298 = vrot.lane.b32.xlu1 %v1296_v19, %s3073_s22 }
0x1526   :  { %v1299_v22 = vpop.permute.xlu1 %1298 }
0x1527   :  { %v1301_v23 = vadd.f32 %v1299_v22, %v1291_v21 }
0x1529   :  { %2950 = vtanh.f32 %v1301_v23 }
0x152a   :  { %2952 = vtanh.f32 %v1020_v8 }
0x152b   :  { %2954 = vpow2.f32 %v2341_v26 }
0x1533   :  { %v2951_v24 = vpop.eup %2950 }
0x1534   :  { %1304 = vrot.lane.b32.xlu0 %v2951_v24, %s3072_s11  ;;  %v2953_v25 = vpop.eup %2952 }
0x1535   :  { %v2955_v27 = vpop.eup %2954 }
0x1536   :  { %v1024_v28 = vadd.f32 1.0, %v2955_v27 }
0x1538   :  { %1030 = vrot.lane.b32.xlu0 %v2953_v25, %s3072_s11  ;;  %2956 = vrcp.f32 %v1024_v28  ;;  %v1179_v25 = vadd.f32 %v3380_v39, %v3443_v10 }
0x1542   :  { %v2957_v31 = vpop.eup %2956 }
0x1543   :  { %v1028_v35 = vmul.f32 %v2957_v31, %v3390_v51 }
0x15a6   :  { %v1305_v29 = vpop.permute.xlu0 %1304 }
0x15a7   :  { %v1307_v30 = vmul.f32 %v2949_v17, %v1305_v29 }
0x15a9   :  { %1309 = vrot.lane.b32.xlu1 %v1307_v30, %s3073_s22 }
0x15aa   :  { %v1031_v32 = vpop.permute.xlu0 %1030 }
0x15ab   :  { %v1033_v33 = vmul.f32 %v2957_v31, %v1031_v32 }
0x15ad   :  { %1035 = vrot.lane.b32.xlu0 %v1033_v33, %s3073_s22 }
0x161b   :  { %v1310_v34 = vpop.permute.xlu1 %1309 }
0x161c   :  { %1312 = vst.msk [vmem:[#allocation7] sm:$0xff] %vm228_vm2, %v1310_v34  ;;  %2641 = vmatmul.mubr.msk.f32.vlgmr.msra.gmra.mrb[12].mxu1 %vm228_vm2, %v1310_v34 }
0x161d   :  { %2827 = vmatpush3.bf16.msra.mxu1 %v3400_v55  ;;  %2662 = vmatprep.mubr.msk.f32.mxu1 %vm3070_vm0, %v3071_v1 }
0x161e   :  { %2828 = vmatprep.subr.bf16.mxu1 %v3069_v0 }
0x161f   :  { %v1036_v36 = vpop.permute.xlu0 %1035 }
0x1620   :  { %v3459_v38 = vadd.f32 %v1036_v36, %v1028_v35 }
0x1621   :  { %2830 = vmatpush3.bf16.msra.mxu1 %v3410_v58 }
0x1622   :  { %2958 = vtanh.f32 %v3459_v38  ;;  %2837 = vmatprep.subr.bf16.mxu1 %v3069_v0 }
0x162c   :  { %v2959_v40 = vpop.eup %2958 }
0x162d   :  { %1041 = vrot.lane.b32.xlu0 %v2959_v40, %s3072_s11 }
0x169f   :  { %v1042_v44 = vpop.permute.xlu0 %1041 }
0x16a0   :  { %v3465_v3 = vmul.f32 %v2957_v31, %v1042_v44 }
0x16a2   :  { %1046 = vrot.lane.b32.xlu0 %v3465_v3, %s3073_s22 }
0x16ef   :  { %v1381_v46 = vpop.f32.mrb[12].mxu1 }
0x16f0   :  { %v1385_v47 = vadd.f32 %v1381_v46, %v1169_v45  ;;  %v2642_v48 = vpop.f32.mrb[13].mxu1 }
0x16f1   :  { %v1184_v48 = vadd.f32 %v3443_v10, %v3387_v43 }
0x16f2   :  { %2960 = vtanh.f32 %v1385_v47  ;;  %v2356_v52 = vmul.f32 -1.442695, %v1385_v47 }
0x16f4   :  { %2962 = vpow2.f32 %v2356_v52 }
0x16fc   :  { %v2961_v49 = vpop.eup %2960 }
0x16fd   :  { %1395 = vrot.lane.b32.xlu1 %v2961_v49, %s3072_s11 }
0x16fe   :  { %v2963_v53 = vpop.eup %2962 }
0x16ff   :  { %v1389_v37 = vadd.f32 1.0, %v2963_v53 }
0x1701   :  { %2964 = vrcp.f32 %v1389_v37 }
0x170b   :  { %v2965_v54 = vpop.eup %2964 }
0x170c   :  { %v1393_v59 = vmul.f32 %v2965_v54, %v1301_v23 }
0x1714   :  { %v1047_v50 = vpop.permute.xlu0 %1046 }
0x1715   :  { %1049 = vst.msk [vmem:[#allocation2 + $0x38] sm:$0xff] %vm228_vm2, %v1047_v50 }
0x171c   :  { %v1066_v51 = vld [vmem:[#allocation2 + $0x38] sm:$0xff] }
0x171d   :  { %2619 = vmatmul.mubr.msk.f32.gmra.mrb[20].mxu0 %vm228_vm2, %v1066_v51 }
0x171e   :  { %2651 = vmatprep.mubr.msk.f32.mxu0 %vm3070_vm0, %v3071_v1 }
0x176f   :  { %v1396_v56 = vpop.permute.xlu1 %1395 }
0x1770   :  { %v1398_v57 = vmul.f32 %v2965_v54, %v1396_v56 }
0x1772   :  { %1400 = vrot.lane.b32.xlu1 %v1398_v57, %s3073_s22 }
0x17e4   :  { %v1401_v60 = vpop.permute.xlu1 %1400 }
0x17e5   :  { %v1403_v61 = vadd.f32 %v1401_v60, %v1393_v59 }
0x17e7   :  { %2966 = vtanh.f32 %v1403_v61 }
0x17f0   :  { %v3477_v63 = vpop.f32.mrb[20].mxu0 }
0x17f1   :  { %v2967_v4 = vpop.eup %2966  ;;  %v3479_v5 = vpop.f32.mrb[21].mxu0 }
0x17f2   :  { %1406 = vrot.lane.b32.xlu1 %v2967_v4, %s3072_s11 }
0x1864   :  { %v1407_v6 = vpop.permute.xlu1 %1406 }
0x1865   :  { %v1409_v7 = vmul.f32 %v2965_v54, %v1407_v6 }
0x1867   :  { %1411 = vrot.lane.b32.xlu1 %v1409_v7, %s3073_s22 }
0x18d9   :  { %v1412_v8 = vpop.permute.xlu1 %1411 }
0x18da   :  { %1414 = vst.msk [vmem:[#allocation7 + $0x8] sm:$0xff] %vm228_vm2, %v1412_v8  ;;  %2652 = vmatmul.mubr.msk.f32.vlgmr.msra.gmra.mrb[22].mxu0 %vm228_vm2, %v1412_v8 }
0x18db   :  { %2833 = vmatpush3.bf16.msra.mxu0 %v3400_v55  ;;  %2673 = vmatprep.mubr.msk.f32.mxu0 %vm3070_vm0, %v3071_v1 }
0x18dc   :  { %2834 = vmatprep.subr.bf16.mxu0 %v3069_v0 }
0x18df   :  { %2836 = vmatpush3.bf16.msra.mxu0 %v3410_v58 }
0x18e0   :  { %2843 = vmatprep.subr.bf16.mxu0 %v3069_v0 }
0x19ad   :  { %v1483_v11 = vpop.f32.mrb[22].mxu0 }
0x19ae   :  { %v1487_v13 = vadd.f32 %v1483_v11, %v1174_v9  ;;  %v2653_v12 = vpop.f32.mrb[23].mxu0  ;;  %v1189_v9 = vadd.f32 %v3385_v42, %v3443_v10 }
0x19b0   :  { %2968 = vtanh.f32 %v1487_v13  ;;  %v2358_v16 = vmul.f32 -1.442695, %v1487_v13 }
0x19b2   :  { %2970 = vpow2.f32 %v2358_v16 }
0x19ba   :  { %v2969_v15 = vpop.eup %2968 }
0x19bb   :  { %1497 = vrot.lane.b32.xlu0 %v2969_v15, %s3072_s11 }
0x19bc   :  { %v2971_v62 = vpop.eup %2970 }
0x19bd   :  { %v1491_v14 = vadd.f32 1.0, %v2971_v62 }
0x19bf   :  { %2972 = vrcp.f32 %v1491_v14 }
0x19c9   :  { %v2973_v2 = vpop.eup %2972 }
0x19ca   :  { %v1495_v19 = vmul.f32 %v2973_v2, %v1403_v61 }
0x1a2d   :  { %v1498_v17 = vpop.permute.xlu0 %1497 }
0x1a2e   :  { %v1500_v18 = vmul.f32 %v2973_v2, %v1498_v17 }
0x1a30   :  { %1502 = vrot.lane.b32.xlu1 %v1500_v18, %s3073_s22 }
0x1aa2   :  { %v1503_v20 = vpop.permute.xlu1 %1502 }
0x1aa3   :  { %v1505_v41 = vadd.f32 %v1503_v20, %v1495_v19 }
0x1aa5   :  { %2974 = vtanh.f32 %v1505_v41 }
0x1aaf   :  { %v2975_v21 = vpop.eup %2974 }
0x1ab0   :  { %1508 = vrot.lane.b32.xlu0 %v2975_v21, %s3072_s11 }
0x1b22   :  { %v1509_v22 = vpop.permute.xlu0 %1508 }
0x1b23   :  { %v1511_v23 = vmul.f32 %v2973_v2, %v1509_v22  ;;  %v1194_v22 = vadd.f32 %v3443_v10, %v3479_v5 }
0x1b25   :  { %1513 = vrot.lane.b32.xlu1 %v1511_v23, %s3073_s22 }
0x1b97   :  { %v1514_v24 = vpop.permute.xlu1 %1513 }
0x1b98   :  { %1516 = vst.msk [vmem:[#allocation7 + $0x10] sm:$0xff] %vm228_vm2, %v1514_v24  ;;  %2663 = vmatmul.mubr.msk.f32.vlgmr.msra.gmra.mrb[14].mxu1 %vm228_vm2, %v1514_v24 }
0x1b99   :  { %2839 = vmatpush3.bf16.msra.mxu1 %v3400_v55  ;;  %2684 = vmatprep.mubr.msk.f32.mxu1 %vm3070_vm0, %v3071_v1 }
0x1b9a   :  { %2840 = vmatprep.subr.bf16.mxu1 %v3069_v0 }
0x1b9d   :  { %2842 = vmatpush3.bf16.msra.mxu1 %v3410_v58 }
0x1b9e   :  { %2849 = vmatprep.subr.bf16.mxu1 %v3069_v0 }
0x1c6b   :  { %v1585_v26 = vpop.f32.mrb[14].mxu1 }
0x1c6c   :  { %v1589_v27 = vadd.f32 %v1585_v26, %v1179_v25  ;;  %v2664_v28 = vpop.f32.mrb[15].mxu1 }
0x1c6e   :  { %2976 = vtanh.f32 %v1589_v27  ;;  %v2360_v30 = vmul.f32 -1.442695, %v1589_v27 }
0x1c70   :  { %2978 = vpow2.f32 %v2360_v30 }
0x1c78   :  { %v2977_v29 = vpop.eup %2976 }
0x1c79   :  { %1599 = vrot.lane.b32.xlu0 %v2977_v29, %s3072_s11 }
0x1c7a   :  { %v2979_v31 = vpop.eup %2978 }
0x1c7b   :  { %v1593_v32 = vadd.f32 1.0, %v2979_v31 }
0x1c7d   :  { %2980 = vrcp.f32 %v1593_v32 }
0x1c87   :  { %v2981_v33 = vpop.eup %2980 }
0x1c88   :  { %v1597_v36 = vmul.f32 %v2981_v33, %v1505_v41 }
0x1ceb   :  { %v1600_v34 = vpop.permute.xlu0 %1599 }
0x1cec   :  { %v1602_v35 = vmul.f32 %v2981_v33, %v1600_v34 }
0x1cee   :  { %1604 = vrot.lane.b32.xlu1 %v1602_v35, %s3073_s22 }
0x1d60   :  { %v1605_v40 = vpop.permute.xlu1 %1604 }
0x1d61   :  { %v1607_v39 = vadd.f32 %v1605_v40, %v1597_v36 }
0x1d63   :  { %2982 = vtanh.f32 %v1607_v39 }
0x1d6d   :  { %v2983_v44 = vpop.eup %2982 }
0x1d6e   :  { %1610 = vrot.lane.b32.xlu0 %v2983_v44, %s3072_s11  ;;  %v1199_v44 = vadd.f32 %v3477_v63, %v3443_v10 }
0x1de0   :  { %v1611_v45 = vpop.permute.xlu0 %1610 }
0x1de1   :  { %v1613_v46 = vmul.f32 %v2981_v33, %v1611_v45 }
0x1de3   :  { %1615 = vrot.lane.b32.xlu1 %v1613_v46, %s3073_s22 }
0x1e55   :  { %v1616_v47 = vpop.permute.xlu1 %1615 }
0x1e56   :  { %1618 = vst.msk [vmem:[#allocation7 + $0x18] sm:$0xff] %vm228_vm2, %v1616_v47  ;;  %2674 = vmatmul.mubr.msk.f32.vlgmr.msra.gmra.mrb[24].mxu0 %vm228_vm2, %v1616_v47 }
0x1e57   :  { %2845 = vmatpush3.bf16.msra.mxu0 %v3400_v55  ;;  %2695 = vmatprep.mubr.msk.f32.mxu0 %vm3070_vm0, %v3071_v1 }
0x1e58   :  { %2846 = vmatprep.subr.bf16.mxu0 %v3069_v0 }
0x1e5b   :  { %2848 = vmatpush3.bf16.msra.mxu0 %v3410_v58 }
0x1e5c   :  { %2855 = vmatprep.subr.bf16.mxu0 %v3069_v0 }
0x1f29   :  { %v1687_v49 = vpop.f32.mrb[24].mxu0 }
0x1f2a   :  { %v1691_v50 = vadd.f32 %v1687_v49, %v1184_v48  ;;  %v2675_v51 = vpop.f32.mrb[25].mxu0 }
0x1f2c   :  { %2984 = vtanh.f32 %v1691_v50  ;;  %v2362_v53 = vmul.f32 -1.442695, %v1691_v50 }
0x1f2e   :  { %2986 = vpow2.f32 %v2362_v53 }
0x1f36   :  { %v2985_v52 = vpop.eup %2984 }
0x1f37   :  { %1701 = vrot.lane.b32.xlu0 %v2985_v52, %s3072_s11 }
0x1f38   :  { %v2987_v37 = vpop.eup %2986 }
0x1f39   :  { %v1695_v54 = vadd.f32 1.0, %v2987_v37 }
0x1f3b   :  { %2988 = vrcp.f32 %v1695_v54 }
0x1f45   :  { %v2989_v56 = vpop.eup %2988 }
0x1f46   :  { %v1699_v60 = vmul.f32 %v2989_v56, %v1607_v39 }
0x1fa9   :  { %v1702_v57 = vpop.permute.xlu0 %1701 }
0x1faa   :  { %v1704_v59 = vmul.f32 %v2989_v56, %v1702_v57 }
0x1fac   :  { %1706 = vrot.lane.b32.xlu1 %v1704_v59, %s3073_s22 }
0x201e   :  { %v1707_v61 = vpop.permute.xlu1 %1706 }
0x201f   :  { %v1709_v43 = vadd.f32 %v1707_v61, %v1699_v60  ;;  %v2078_v60 = vld [vmem:[%s3669_s12] sm:$0xff]  ;;  %v2079_v61 = vld [vmem:[%s3669_s12 + $0x8] sm:$0xff] }
0x2021   :  { %2990 = vtanh.f32 %v1709_v43 }
0x202b   :  { %v2991_v4 = vpop.eup %2990 }
0x202c   :  { %1712 = vrot.lane.b32.xlu0 %v2991_v4, %s3072_s11  ;;  %v2081_v4 = vld [vmem:[%s3669_s12 + $0x18] sm:$0xff] }
0x209e   :  { %v1713_v6 = vpop.permute.xlu0 %1712 }
0x209f   :  { %v1715_v7 = vmul.f32 %v2989_v56, %v1713_v6 }
0x20a1   :  { %1717 = vrot.lane.b32.xlu1 %v1715_v7, %s3073_s22  ;;  %v2082_v7 = vld [vmem:[%s3669_s12 + $0x20] sm:$0xff] }
0x2113   :  { %v1718_v8 = vpop.permute.xlu1 %1717 }
0x2114   :  { %1720 = vst.msk [vmem:[#allocation7 + $0x20] sm:$0xff] %vm228_vm2, %v1718_v8  ;;  %2685 = vmatmul.mubr.msk.f32.vlgmr.msra.gmra.mrb[16].mxu1 %vm228_vm2, %v1718_v8  ;;  %v2083_v8 = vld [vmem:[%s3669_s12 + $0x28] sm:$0xff] }
0x2115   :  { %2851 = vmatpush3.bf16.msra.mxu1 %v3400_v55  ;;  %2706 = vmatprep.mubr.msk.f32.mxu1 %vm3070_vm0, %v3071_v1 }
0x2116   :  { %2852 = vmatprep.subr.bf16.mxu1 %v3069_v0 }
0x2119   :  { %2854 = vmatpush3.bf16.msra.mxu1 %v3410_v58 }
0x211a   :  { %2867 = vmatprep.subr.bf16.mxu1 %v3069_v0 }
0x21e7   :  { %v1789_v11 = vpop.f32.mrb[16].mxu1 }
0x21e8   :  { %v1793_v13 = vadd.f32 %v1789_v11, %v1189_v9  ;;  %v2686_v12 = vpop.f32.mrb[17].mxu1  ;;  %v2862_v9 = vpack.c.bf16 %v2083_v8, %v2082_v7  ;;  %v2084_v11 = vld [vmem:[%s3669_s12 + $0x30] sm:$0xff] }
0x21ea   :  { %2992 = vtanh.f32 %v1793_v13  ;;  %v2364_v55 = vmul.f32 -1.442695, %v1793_v13  ;;  %v2085_v13 = vld [vmem:[%s3669_s12 + $0x38] sm:$0xff] }
0x21eb   :  { %v2865_v12 = vpack.c.bf16 %v2085_v13, %v2084_v11 }
0x21ec   :  { %2994 = vpow2.f32 %v2364_v55 }
0x21f4   :  { %v2993_v15 = vpop.eup %2992 }
0x21f5   :  { %1803 = vrot.lane.b32.xlu0 %v2993_v15, %s3072_s11 }
0x21f6   :  { %v2995_v16 = vpop.eup %2994 }
0x21f7   :  { %v1797_v62 = vadd.f32 1.0, %v2995_v16  ;;  %v2036_v16 = vstv %s3687_s8  ;;  %s2303_s8 = sshll.u32 %s3074_s30, 4  ;;  %s2304_s8 = int_to_ptr.vmem [resolvable:$true] %s2303_s8 }
0x21f8   :  { %p3047_p9 = scmp.lt.s32.totalorder %s2304_s8, %s2304_s8 }
0x21f9   :  { %2996 = vrcp.f32 %v1797_v62 }
0x2203   :  { %v2997_v14 = vpop.eup %2996 }
0x2204   :  { %v1801_v17 = vmul.f32 %v2997_v14, %v1709_v43  ;;  %v2856_v43 = vpack.c.bf16 %v2079_v61, %v2078_v60 }
0x2267   :  { %v1804_v2 = vpop.permute.xlu0 %1803 }
0x2268   :  { %v1806_v58 = vmul.f32 %v2997_v14, %v1804_v2 }
0x226a   :  { %1808 = vrot.lane.b32.xlu1 %v1806_v58, %s3073_s22 }
0x22dc   :  { %v1809_v18 = vpop.permute.xlu1 %1808 }
0x22dd   :  { %v1811_v42 = vadd.f32 %v1809_v18, %v1801_v17 }
0x22df   :  { %2998 = vtanh.f32 %v1811_v42 }
0x22e9   :  { %v2999_v19 = vpop.eup %2998 }
0x22ea   :  { %1814 = vrot.lane.b32.xlu0 %v2999_v19, %s3072_s11 }
0x235c   :  { %v1815_v20 = vpop.permute.xlu0 %1814 }
0x235d   :  { %v1817_v41 = vmul.f32 %v2997_v14, %v1815_v20 }
0x235f   :  { %1819 = vrot.lane.b32.xlu1 %v1817_v41, %s3073_s22 }
0x23d1   :  { %v1820_v21 = vpop.permute.xlu1 %1819 }
0x23d2   :  { %1822 = vst.msk [vmem:[#allocation7 + $0x28] sm:$0xff] %vm228_vm2, %v1820_v21  ;;  %2696 = vmatmul.mubr.msk.f32.vlgmr.msra.gmra.mrb[26].mxu0 %vm228_vm2, %v1820_v21 }
0x23d3   :  { %2725 = vmatprep.mubr.msk.f32.mxu0 %vm3070_vm0, %v3071_v1  ;;  %2857 = vmatpush3.bf16.msra.mxu0 %v2856_v43 }
0x23d4   :  { %2858 = vmatprep.subr.bf16.mxu0 %v3069_v0 }
0x24a5   :  { %v1891_v23 = vpop.f32.mrb[26].mxu0 }
0x24a6   :  { %v1895_v24 = vadd.f32 %v1891_v23, %v1194_v22  ;;  %v2697_v25 = vpop.f32.mrb[27].mxu0 }
0x24a8   :  { %3000 = vtanh.f32 %v1895_v24  ;;  %v2366_v27 = vmul.f32 -1.442695, %v1895_v24 }
0x24aa   :  { %3002 = vpow2.f32 %v2366_v27 }
0x24b2   :  { %v3001_v26 = vpop.eup %3000 }
0x24b3   :  { %1905 = vrot.lane.b32.xlu0 %v3001_v26, %s3072_s11 }
0x24b4   :  { %v3003_v28 = vpop.eup %3002 }
0x24b5   :  { %v1899_v29 = vadd.f32 1.0, %v3003_v28 }
0x24b7   :  { %3004 = vrcp.f32 %v1899_v29 }
0x24c1   :  { %v3005_v30 = vpop.eup %3004 }
0x24c2   :  { %v1903_v33 = vmul.f32 %v3005_v30, %v1811_v42 }
0x2525   :  { %v1906_v31 = vpop.permute.xlu0 %1905 }
0x2526   :  { %v1908_v32 = vmul.f32 %v3005_v30, %v1906_v31 }
0x2528   :  { %1910 = vrot.lane.b32.xlu1 %v1908_v32, %s3073_s22 }
0x259a   :  { %v1911_v34 = vpop.permute.xlu1 %1910 }
0x259b   :  { %v1913_v5 = vadd.f32 %v1911_v34, %v1903_v33  ;;  %v2369_v33 = vld [vmem:[%s3667_s10] ss:$0 sm:$0xff] }
0x259d   :  { %3006 = vtanh.f32 %v1913_v5 }
0x25a7   :  { %v3007_v35 = vpop.eup %3006 }
0x25a8   :  { %1916 = vrot.lane.b32.xlu0 %v3007_v35, %s3072_s11  ;;  %v2370_v35 = vld [vmem:[#allocation4] ss:$0 sm:$0xff] }
0x261a   :  { %v1917_v36 = vpop.permute.xlu0 %1916 }
0x261b   :  { %v1919_v40 = vmul.f32 %v3005_v30, %v1917_v36 }
0x261d   :  { %1921 = vrot.lane.b32.xlu1 %v1919_v40, %s3073_s22 }
0x268f   :  { %v1922_v39 = vpop.permute.xlu1 %1921 }
0x2690   :  { %1924 = vst.msk [vmem:[#allocation7 + $0x30] sm:$0xff] %vm228_vm2, %v1922_v39  ;;  %2707 = vmatmul.mubr.msk.f32.vlgmr.msra.gmra.mrb[18].mxu1 %vm228_vm2, %v1922_v39  ;;  %v2206_v39 = vld [vmem:[%s3673_s16] sm:$0xff] }
0x2691   :  { %2744 = vmatprep.mubr.msk.f32.mxu1 %vm3070_vm0, %v3071_v1 }
0x2763   :  { %v1993_v45 = vpop.f32.mrb[18].mxu1 }
0x2764   :  { %v1997_v46 = vadd.f32 %v1993_v45, %v1199_v44  ;;  %v2708_v47 = vpop.f32.mrb[19].mxu1  ;;  %v2207_v44 = vld [vmem:[%s3673_s16 + $0x8] sm:$0xff] }
0x2765   :  { %v2868_v45 = vpack.c.bf16 %v2207_v44, %v2206_v39  ;;  %v2209_v47 = vld [vmem:[%s3673_s16 + $0x18] sm:$0xff] }
0x2766   :  { %3008 = vtanh.f32 %v1997_v46  ;;  %v2368_v49 = vmul.f32 -1.442695, %v1997_v46  ;;  %v2208_v46 = vld [vmem:[%s3673_s16 + $0x10] sm:$0xff] }
0x2767   :  { %2869 = vmatpush3.bf16.msra.mxu1 %v2868_v45 }
0x2768   :  { %3010 = vpow2.f32 %v2368_v49  ;;  %2870 = vmatprep.subr.bf16.mxu1 %v3069_v0  ;;  %v2210_v49 = vld [vmem:[%s3673_s16 + $0x20] sm:$0xff] }
0x2770   :  { %v3009_v48 = vpop.eup %3008 }
0x2771   :  { %2007 = vrot.lane.b32.xlu0 %v3009_v48, %s3072_s11  ;;  %v2871_v48 = vpack.c.bf16 %v2209_v47, %v2208_v46 }
0x2772   :  { %v3011_v50 = vpop.eup %3010 }
0x2773   :  { %v2001_v51 = vadd.f32 1.0, %v3011_v50  ;;  %2872 = vmatpush3.bf16.msra.mxu1 %v2871_v48  ;;  %v2211_v50 = vld [vmem:[%s3673_s16 + $0x28] sm:$0xff] }
0x2774   :  { %2873 = vmatprep.subr.bf16.mxu1 %v3069_v0 }
0x2775   :  { %3012 = vrcp.f32 %v2001_v51  ;;  %v2874_v51 = vpack.c.bf16 %v2211_v50, %v2210_v49 }
0x2777   :  { %2875 = vmatpush3.bf16.msra.mxu1 %v2874_v51 }
0x2778   :  { %2876 = vmatprep.subr.bf16.mxu1 %v3069_v0 }
0x277f   :  { %v3013_v52 = vpop.eup %3012 }
0x2780   :  { %v2005_v1 = vmul.f32 %v3013_v52, %v1913_v5 }
0x27e3   :  { %v2008_v53 = vpop.permute.xlu0 %2007 }
0x27e4   :  { %v2010_v37 = vmul.f32 %v3013_v52, %v2008_v53  ;;  %v2213_v53 = vld [vmem:[%s3673_s16 + $0x38] sm:$0xff] }
0x27e6   :  { %2012 = vrot.lane.b32.xlu1 %v2010_v37, %s3073_s22 }
0x2858   :  { %v2013_v54 = vpop.permute.xlu1 %2012 }
0x2859   :  { %v2015_v10 = vadd.f32 %v2013_v54, %v2005_v1  ;;  %v2371_v1 = vld [vmem:[%s3670_s13] ss:$0 sm:$0xff] }
0x285b   :  { %3014 = vtanh.f32 %v2015_v10  ;;  %v2028_v55 = vadd.f32 %v2015_v10, %v3459_v38 }
0x2865   :  { %v3015_v63 = vpop.eup %3014 }
0x2866   :  { %2018 = vrot.lane.b32.xlu0 %v3015_v63, %s3072_s11 }
0x28d8   :  { %v2019_v56 = vpop.permute.xlu0 %2018 }
0x28d9   :  { %v2021_v57 = vmul.f32 %v3013_v52, %v2019_v56  ;;  %v2212_v52 = vld [vmem:[%s3673_s16 + $0x30] sm:$0xff] }
0x28da   :  { %v2877_v37 = vpack.c.bf16 %v2213_v53, %v2212_v52 }
0x28db   :  { %v2027_v59 = vadd.f32 %v2021_v57, %v3465_v3  ;;  %2023 = vrot.lane.b32.xlu0 %v2021_v57, %s3073_s22  ;;  %v2080_v3 = vld [vmem:[%s3669_s12 + $0x10] sm:$0xff]  ;;  %s3042_s12 = scalar_lea.vmem %s2304_s8, 1024 }
0x28dc   :  { %v2859_v6 = vpack.c.bf16 %v2081_v4, %v2080_v3  ;;  %2878 = vmatpush3.bf16.msra.mxu1 %v2877_v37  ;;  %p3043_p8 = scmp.ne.s32.totalorder %s2304_s8, %s3042_s12  ;;  %p3048_p10 = scmp.lt.s32.totalorder %s3042_s12, %s3042_s12 }
0x28dd   :  { %2031 = vrot.lane.b32.xlu1 %v2027_v59, %s3073_s22 }
0x28de   :  { %2860 = vmatpush3.bf16.msra.mxu0 %v2859_v6  ;;  %p3049_p11 = por %p3048_p10, %p3047_p9 }
0x28df   :  { %2861 = vmatprep.subr.bf16.mxu0 %v3069_v0 }
0x28e0   :  { %p3050_p12 = pnand %p3049_p11, %p3043_p8 }
0x28e2   :  { %2863 = vmatpush3.bf16.msra.mxu0 %v2862_v9 }
0x28e3   :  { %2864 = vmatprep.subr.bf16.mxu0 %v3069_v0 }
0x28e6   :  { %2866 = vmatpush3.bf16.msra.mxu0 %v2865_v12 }
0x294d   :  { %v2024_v15 = vpop.permute.xlu0 %2023 }
0x294e   :  { %2026 = vst.msk [vmem:[#allocation7 + $0x38] sm:$0xff] %vm228_vm2, %v2024_v15 }
0x294f   :  { %v2032_v62 = vpop.permute.xlu1 %2031 }
0x2950   :  { %v2034_v14 = vsel %vm228_vm2, %v2032_v62, %v2028_v55 }
0x2951   :  { %vm2035_vm4 = vcmp.ge.f32.partialorder %v2034_v14, 0.0  ;;  %v2037_v2 = vmul.f32 %v2036_v16, %v2034_v14 }
0x2953   :  { %v2038_v58 = vsel %vm2035_vm4, %v2034_v14, %v2037_v2  ;;  %v2373_v2 = vld [vmem:[%s3671_s14] ss:$0 sm:$0xff] }
0x2954   :  { %v2042_v17 = vsel %vm2041_vm3, %v2038_v58, 0.0 }
0x2955   :  { %v2043_v18 = vrot.slane %v2042_v17, 4 }
0x2957   :  { %v2044_v42 = vadd.f32 %v2043_v18, %v2042_v17  ;;  %v2374_v18 = vld [vmem:[%s3672_s15] ss:$0 sm:$0xff] }
0x2959   :  { %v2045_v19 = vrot.slane %v2044_v42, 2 }
0x295b   :  { %v2046_v20 = vadd.f32 %v2045_v19, %v2044_v42 }
0x295d   :  { %v2047_v38 = vrot.slane %v2046_v20, 1 }
0x295f   :  { %v2048_v41 = vadd.f32 %v2047_v38, %v2046_v20 }
0x2961   :  { %v2050_v21 = vmul.f32 0.125, %v2048_v41 }
0x2963   :  { %v2051_v22 = vsub.f32 %v2038_v58, %v2050_v21 }
0x2965   :  { %v2052_v23 = vmul.f32 %v2051_v22, %v2051_v22  ;;  %v2067_v34 = vmul.f32 %v2369_v33, %v2051_v22 }
0x2967   :  { %v2053_v24 = vsel %vm2041_vm3, %v2052_v23, 0.0 }
0x2968   :  { %v2054_v25 = vrot.slane %v2053_v24, 4 }
0x296a   :  { %v2055_v26 = vadd.f32 %v2054_v25, %v2053_v24 }
0x296c   :  { %v2056_v27 = vrot.slane %v2055_v26, 2 }
0x296e   :  { %v2057_v28 = vadd.f32 %v2056_v27, %v2055_v26 }
0x2970   :  { %v2058_v29 = vrot.slane %v2057_v28, 1 }
0x2972   :  { %v2059_v30 = vadd.f32 %v2058_v29, %v2057_v28 }
0x2974   :  { %v2060_v31 = vmul.f32 0.125, %v2059_v30 }
0x2976   :  { %v2068_v32 = vadd.f32 1e-05, %v2060_v31 }
0x2978   :  { %3016 = vrsqrt.f32 %v2068_v32 }
0x2982   :  { %v3017_v5 = vpop.eup %3016 }
0x2983   :  { %v2070_v36 = vmul.f32 %v3017_v5, %v2067_v34 }
0x2985   :  { %v2077_v40 = vadd.f32 %v2370_v35, %v2070_v36 }
0x2987   :  { %2726 = vmatmul.mubr.msk.f32.vlgmr.msra.gmra.mrb[28].mxu0 %vm2041_vm3, %v2077_v40 }
0x2a5a   :  { %v2162_v54 = vpop.f32.mrb[28].mxu0 }
0x2a5b   :  { %v2163_v10 = vadd.f32 %v2371_v1, %v2162_v54  ;;  %v2727_v63 = vpop.f32.mrb[29].mxu0 }
0x2a5d   :  { %vm2166_vm5 = vcmp.ge.f32.partialorder %v2163_v10, 0.0  ;;  %v2167_v56 = vmul.f32 %v2163_v10, %v2036_v16 }
0x2a5f   :  { %v2168_v0 = vsel %vm2166_vm5, %v2163_v10, %v2167_v56 }
0x2a60   :  { %v2171_v57 = vsel %vm2041_vm3, %v2168_v0, 0.0 }
0x2a61   :  { %v2172_v59 = vrot.slane %v2171_v57, 4 }
0x2a63   :  { %v2173_v60 = vadd.f32 %v2172_v59, %v2171_v57 }
0x2a65   :  { %v2174_v61 = vrot.slane %v2173_v60, 2 }
0x2a67   :  { %v2175_v43 = vadd.f32 %v2174_v61, %v2173_v60 }
0x2a69   :  { %v2176_v3 = vrot.slane %v2175_v43, 1 }
0x2a6b   :  { %v2177_v4 = vadd.f32 %v2176_v3, %v2175_v43 }
0x2a6d   :  { %v2178_v6 = vmul.f32 0.125, %v2177_v4 }
0x2a6f   :  { %v2179_v7 = vsub.f32 %v2168_v0, %v2178_v6 }
0x2a71   :  { %v2180_v8 = vmul.f32 %v2179_v7, %v2179_v7  ;;  %v2195_v58 = vmul.f32 %v2373_v2, %v2179_v7 }
0x2a73   :  { %v2181_v9 = vsel %vm2041_vm3, %v2180_v8, 0.0 }
0x2a74   :  { %v2182_v11 = vrot.slane %v2181_v9, 4 }
0x2a76   :  { %v2183_v13 = vadd.f32 %v2182_v11, %v2181_v9 }
0x2a78   :  { %v2184_v12 = vrot.slane %v2183_v13, 2 }
0x2a7a   :  { %v2185_v15 = vadd.f32 %v2184_v12, %v2183_v13 }
0x2a7c   :  { %v2186_v55 = vrot.slane %v2185_v15, 1 }
0x2a7e   :  { %v2187_v16 = vadd.f32 %v2186_v55, %v2185_v15 }
0x2a80   :  { %v2188_v62 = vmul.f32 0.125, %v2187_v16 }
0x2a82   :  { %v2196_v14 = vadd.f32 1e-05, %v2188_v62 }
0x2a84   :  { %3018 = vrsqrt.f32 %v2196_v14 }
0x2a8e   :  { %v3019_v17 = vpop.eup %3018 }
0x2a8f   :  { %v2198_v42 = vmul.f32 %v3019_v17, %v2195_v58 }
0x2a91   :  { %v2205_v19 = vadd.f32 %v2374_v18, %v2198_v42 }
0x2a93   :  { %2745 = vmatmul.mubr.msk.f32.vlgmr.msra.gmra.mrb[20].mxu1 %vm2041_vm3, %v2205_v19 }
0x2a94   :  { %3053 = shalt.err (!%p3050_p12)
}
0x2a95   :  { %s3054_s29 = scalar_lea.hbm %s3676_s19, 1024 }
0x2a96   :  { %p3055_p13 = scmp.ne.s32.totalorder %s3676_s19, %s3054_s29  ;;  %p3058_p0 = scmp.lt.u32.totalorder %s3054_s29, %s3676_s19 }
0x2a98   :  { %p3060_p1 = pnand %p3058_p0, %p3055_p13 }
0x2a9a   :  { %3063 = shalt.err (!%p3060_p1)
}
0x2a9b   :  { %s3075_s10 = smov 128   ;;  %s3076_s2 = smov 8   ;;  %v2375_v20 = vld [vmem:[%s3674_s17] ss:$0 sm:$0xff]  ;;  %vm2294_vm6 = vcmask 31744  }
0x2a9c   :  { %2309 = dma.vmem_to_hbm [thread:$0]  %s2304_s8, 1024, %s3676_s19, [#allocation6], %s3075_s10, %s3075_s10, %s3076_s2  }
0x2b66   :  { %v2290_v38 = vpop.f32.mrb[20].mxu1 }
0x2b67   :  { %v2291_v41 = vadd.f32 %v2375_v20, %v2290_v38  ;;  %v2746_v21 = vpop.f32.mrb[21].mxu1 }
0x2b69   :  { %2295 = vst.msk [vmem:[%s3675_s18] sm:$0xff] %vm2294_vm6, %v2291_v41 }
0x2b6a   :  { %3066 = dma.done.wait [#allocation6], 1024  }
0x2b6b   :  { %3067 = vsyncadd [#allocation6], 4294966272 }
0x2b6c   :  { %2315 = vsyncpa [#allocation5], 1 }
0x2b6d   :  { %2316 = vsyncpa [#allocation6], 1 }

</bundles_post_ra>
